<compile_context>
chip_gen: v7x
topology: tpu7x:2x2x1
jax: 0.10.0
libtpu: 0.0.40
codegen_flags: <defaults>
</compile_context>

<pallas_src>
import functools

import jax
import jax.numpy as jnp
from jax import lax
from jax.experimental import pallas as pl
from jax.experimental.pallas import tpu as pltpu


# ---------------------------------------------------------------------------
# Fused matmul (+ BN scale/shift + optional residual + optional ReLU) kernel.
# ---------------------------------------------------------------------------
def _fused_matmul_kernel(x_ref, w_ref, scale_ref, shift_ref, *rest,
                         apply_relu, add_residual, single_k):
    if add_residual:
        res_ref, o_ref = rest
    else:
        (o_ref,) = rest

    def epilogue(acc):
        out = acc * scale_ref[...] + shift_ref[...]
        if add_residual:
            out = out + res_ref[...]
        if apply_relu:
            out = jnp.maximum(out, 0.0)
        return out.astype(o_ref.dtype)

    if single_k:
        # Single reduction step: no accumulator, write the output tile once.
        o_ref[...] = epilogue(
            jnp.dot(x_ref[...], w_ref[...], preferred_element_type=jnp.float32))
    else:
        k = pl.program_id(2)

        @pl.when(k == 0)
        def _():
            o_ref[...] = jnp.zeros_like(o_ref)

        # Accumulate directly into the resident f32 output block (no scratch).
        o_ref[...] += jnp.dot(x_ref[...], w_ref[...],
                              preferred_element_type=jnp.float32)

        @pl.when(k == pl.num_programs(2) - 1)
        def _():
            o_ref[...] = epilogue(o_ref[...])


def _pick_tile(dim, cap, align):
    """Largest tile <= cap that divides dim and is a multiple of `align`;
    falls back to the full extent (always legal w.r.t. the (8,128) rule)."""
    if dim <= cap:
        return dim
    t = (cap // align) * align
    while t >= align:
        if dim % t == 0:
            return t
        t -= align
    return dim


def _fused_matmul(x2d, w2d, scale, shift, residual=None, apply_relu=True):
    M, K = x2d.shape
    K2, N = w2d.shape
    assert K == K2
    scale2d = scale.reshape(1, N).astype(jnp.float32)
    shift2d = shift.reshape(1, N).astype(jnp.float32)

    tm = _pick_tile(M, 256, 8)
    tn = _pick_tile(N, 512, 128)   # lane-dense output stores
    tk = _pick_tile(K, 512, 128)
    gm, gn, gk = M // tm, N // tn, K // tk
    single_k = gk == 1
    add_residual = residual is not None

    kernel = functools.partial(
        _fused_matmul_kernel, apply_relu=apply_relu,
        add_residual=add_residual, single_k=single_k)

    in_specs = [
        pl.BlockSpec((tm, tk), lambda i, j, k: (i, k)),
        pl.BlockSpec((tk, tn), lambda i, j, k: (k, j)),
        pl.BlockSpec((1, tn), lambda i, j, k: (0, j)),
        pl.BlockSpec((1, tn), lambda i, j, k: (0, j)),
    ]
    args = [x2d, w2d, scale2d, shift2d]
    if add_residual:
        in_specs.append(pl.BlockSpec((tm, tn), lambda i, j, k: (i, j)))
        args.append(residual.astype(jnp.float32))

    cost = pl.CostEstimate(
        flops=2 * M * N * K,
        transcendentals=0,
        bytes_accessed=4 * (M * K + K * N + M * N
                            + (M * N if add_residual else 0)),
    )

    return pl.pallas_call(
        kernel,
        out_shape=jax.ShapeDtypeStruct((M, N), jnp.float32),
        grid_spec=pltpu.PrefetchScalarGridSpec(
            num_scalar_prefetch=0,
            grid=(gm, gn, gk),
            in_specs=in_specs,
            out_specs=pl.BlockSpec((tm, tn), lambda i, j, k: (i, j)),
        ),
        compiler_params=pltpu.CompilerParams(
            dimension_semantics=("parallel", "parallel", "arbitrary")),
        cost_estimate=cost,
    )(*args)


# ---------------------------------------------------------------------------
# im2col (layout plumbing only) + BasicBlock forward.
# ---------------------------------------------------------------------------
def _im2col_3x3(x_nhwc, stride):
    """3x3 / pad=1 / stride=s patch extraction -> (N*Ho*Wo, 9*C)."""
    N, H, W, C = x_nhwc.shape
    Ho = (H + 2 - 3) // stride + 1
    Wo = (W + 2 - 3) // stride + 1
    xp = jnp.pad(x_nhwc, ((0, 0), (1, 1), (1, 1), (0, 0)))
    cols = []
    for ky in range(3):
        for kx in range(3):
            patch = xp[:, ky: ky + (Ho - 1) * stride + 1: stride,
                       kx: kx + (Wo - 1) * stride + 1: stride, :]
            cols.append(patch)
    xcol = jnp.concatenate(cols, axis=-1)            # (N, Ho, Wo, 9*C)
    return xcol.reshape(N * Ho * Wo, 9 * C), (N, Ho, Wo)


@functools.partial(jax.jit, static_argnames=("stride", "dropout_rate"))
def basic_block_forward(x_nhwc, params, stride=1, dropout_rate=0.0):
    # TODO(synk): F.dropout2d (channel-wise dropout) not implemented; the demo
    # uses dropout_rate=0 (the module default), where it is a no-op.
    assert dropout_rate == 0.0
    # TODO(synk): BatchNorm applied in inference mode (running stats folded
    # into per-channel scale/shift); training-mode batch statistics are not
    # computed inside the kernels.

    in_planes = x_nhwc.shape[-1]
    planes = params["w1"].shape[-1]

    # conv1 (3x3, stride) + bn1 + relu  -- one fused Pallas matmul.
    xcol, (N, Ho, Wo) = _im2col_3x3(x_nhwc, stride)
    out1 = _fused_matmul(xcol, params["w1"].reshape(9 * in_planes, planes),
                         params["scale1"], params["shift1"], apply_relu=True)
    out1_nhwc = out1.reshape(N, Ho, Wo, planes)

    # shortcut: identity, or 1x1 conv (stride) + bn.
    if stride != 1 or in_planes != planes:
        xs = x_nhwc[:, ::stride, ::stride, :].reshape(N * Ho * Wo, in_planes)
        shortcut = _fused_matmul(xs, params["ws"], params["scale_s"],
                                 params["shift_s"], apply_relu=False)
    else:
        shortcut = x_nhwc.reshape(N * Ho * Wo, planes)

    # conv2 (3x3, stride 1) + bn2 + residual add + relu  -- fully fused.
    x2col, _ = _im2col_3x3(out1_nhwc, 1)
    out2 = _fused_matmul(x2col, params["w2"].reshape(9 * planes, planes),
                         params["scale2"], params["shift2"],
                         residual=shortcut, apply_relu=True)
    return out2.reshape(N, Ho, Wo, planes)


# ---------------------------------------------------------------------------
# Parameters, pure-JAX reference, and demo.
# ---------------------------------------------------------------------------
def _bn_fold(gamma, beta, mean, var, eps=1e-5):
    scale = gamma / jnp.sqrt(var + eps)
    return scale, beta - mean * scale


def _make_params(key, in_planes, planes, stride):
    ks = jax.random.split(key, 16)

    def bn(i):
        gamma = 1.0 + 0.1 * jax.random.normal(ks[i], (planes,), jnp.float32)
        beta = 0.1 * jax.random.normal(ks[i + 1], (planes,), jnp.float32)
        mean = 0.1 * jax.random.normal(ks[i + 2], (planes,), jnp.float32)
        var = jax.random.uniform(ks[i + 3], (planes,), jnp.float32, 0.5, 1.5)
        return _bn_fold(gamma, beta, mean, var)

    w1 = 0.1 * jax.random.normal(ks[0], (3, 3, in_planes, planes), jnp.float32)
    w2 = 0.1 * jax.random.normal(ks[1], (3, 3, planes, planes), jnp.float32)
    s1, b1 = bn(2)
    s2, b2 = bn(6)
    params = dict(w1=w1, scale1=s1, shift1=b1, w2=w2, scale2=s2, shift2=b2,
                  ws=None, scale_s=None, shift_s=None)
    if stride != 1 or in_planes != planes:
        params["ws"] = 0.1 * jax.random.normal(
            ks[10], (in_planes, planes), jnp.float32)
        ss, bs = bn(11)
        params["scale_s"], params["shift_s"] = ss, bs
    return params


def _ref_basic_block(x, params, stride):
    def conv3x3(v, w, s):
        return lax.conv_general_dilated(
            v, w, window_strides=(s, s), padding=((1, 1), (1, 1)),
            dimension_numbers=("NHWC", "HWIO", "NHWC"),
            precision=lax.Precision.HIGHEST)

    out = conv3x3(x, params["w1"], stride) * params["scale1"] + params["shift1"]
    out = jnp.maximum(out, 0.0)
    out = conv3x3(out, params["w2"], 1) * params["scale2"] + params["shift2"]
    if params["ws"] is not None:
        sc = lax.conv_general_dilated(
            x, params["ws"][None, None], window_strides=(stride, stride),
            padding=((0, 0), (0, 0)),
            dimension_numbers=("NHWC", "HWIO", "NHWC"),
            precision=lax.Precision.HIGHEST)
        sc = sc * params["scale_s"] + params["shift_s"]
    else:
        sc = x
    return jnp.maximum(out + sc, 0.0)


if __name__ == "__main__":
    root = jax.random.PRNGKey(0)
    kx, kp1, kp2, kp3 = jax.random.split(root, 4)

    N, H, W = 2, 16, 16
    configs = [
        (4, 8, 1, kp1),   # projection shortcut (channel change)
        (8, 8, 1, kp2),   # identity shortcut
        (4, 8, 2, kp3),   # strided projection shortcut
    ]

    for in_planes, planes, stride, kp in configs:
        x = jax.random.normal(kx, (N, H, W, in_planes), jnp.float32)
        params = _make_params(kp, in_planes, planes, stride)
        out = basic_block_forward(x, params, stride=stride)
        out = jax.block_until_ready(out)
        ref = _ref_basic_block(x, params, stride)
        assert out.shape == ref.shape
        assert jnp.allclose(out, ref, atol=1e-2, rtol=1e-2), (
            f"mismatch: in={in_planes} planes={planes} stride={stride}")

    print("KERNEL_OK")
</pallas_src>

<mosaic_0001>
module attributes {stable_mosaic.version = 11 : i64} {
  func.func @_fused_matmul_kernel(%arg0: i32, %arg1: i32, %arg2: i32, %arg3: memref<256x36xf32, #tpu.memory_space<vmem>>, %arg4: memref<36x8xf32, #tpu.memory_space<vmem>>, %arg5: memref<1x8xf32, #tpu.memory_space<vmem>>, %arg6: memref<1x8xf32, #tpu.memory_space<vmem>>, %arg7: memref<256x8xf32, #tpu.memory_space<vmem>>) attributes {dimension_semantics = [#tpu.dimension_semantics<parallel>, #tpu.dimension_semantics<parallel>, #tpu.dimension_semantics<arbitrary>], iteration_bounds = array<i64: 2, 1, 1>, scalar_prefetch = 0 : i64, scratch_operands = 0 : i64, tpu.core_type = #tpu.core_type<tc>, window_params = [{transform_indices = @transform_0, window_bounds = array<i64: 256, 36>}, {transform_indices = @transform_1, window_bounds = array<i64: 36, 8>}, {transform_indices = @transform_2, window_bounds = array<i64: 1, 8>}, {transform_indices = @transform_3, window_bounds = array<i64: 1, 8>}, {transform_indices = @transform_4, window_bounds = array<i64: 256, 8>}]} {
    %c0 = arith.constant 0 : index
    %c0_0 = arith.constant 0 : index
    %0 = vector.load %arg3[%c0, %c0_0] : memref<256x36xf32, #tpu.memory_space<vmem>>, vector<256x36xf32>
    %c0_1 = arith.constant 0 : index
    %c0_2 = arith.constant 0 : index
    %1 = vector.load %arg4[%c0_1, %c0_2] : memref<36x8xf32, #tpu.memory_space<vmem>>, vector<36x8xf32>
    %cst = arith.constant dense<0.000000e+00> : vector<256x8xf32>
    %2 = tpu.matmul %0, %1, %cst {dimension_numbers = #tpu.dot_dimension_numbers<[1], [0], [0], [1], [0, 0, 1, 1], [], []>} : vector<256x36xf32>, vector<36x8xf32>, vector<256x8xf32> -> vector<256x8xf32>
    %c0_3 = arith.constant 0 : index
    %c0_4 = arith.constant 0 : index
    %3 = vector.load %arg5[%c0_3, %c0_4] : memref<1x8xf32, #tpu.memory_space<vmem>>, vector<1x8xf32>
    %4 = vector.broadcast %3 : vector<1x8xf32> to vector<256x8xf32>
    %5 = arith.mulf %2, %4 : vector<256x8xf32>
    %c0_5 = arith.constant 0 : index
    %c0_6 = arith.constant 0 : index
    %6 = vector.load %arg6[%c0_5, %c0_6] : memref<1x8xf32, #tpu.memory_space<vmem>>, vector<1x8xf32>
    %7 = vector.broadcast %6 : vector<1x8xf32> to vector<256x8xf32>
    %8 = arith.addf %5, %7 : vector<256x8xf32>
    %cst_7 = arith.constant 0.000000e+00 : f32
    %9 = vector.broadcast %cst_7 : f32 to vector<256x8xf32>
    %10 = arith.maximumf %8, %9 : vector<256x8xf32>
    %c0_8 = arith.constant 0 : index
    %c0_9 = arith.constant 0 : index
    %11 = vector.load %arg7[%c0_8, %c0_9] : memref<256x8xf32, #tpu.memory_space<vmem>>, vector<256x8xf32>
    tpu.vector_store %arg7[%c0_8, %c0_9], %10 {strides = array<i32>} : memref<256x8xf32, #tpu.memory_space<vmem>>, vector<256x8xf32>,
    return
  }
  func.func @transform_0(%arg0: i32, %arg1: i32, %arg2: i32) -> (i32, i32) {
    %c0_i32 = arith.constant 0 : i32
    return %arg0, %arg2 : i32, i32
  }
  func.func @transform_1(%arg0: i32, %arg1: i32, %arg2: i32) -> (i32, i32) {
    %c0_i32 = arith.constant 0 : i32
    return %arg2, %arg1 : i32, i32
  }
  func.func @transform_2(%arg0: i32, %arg1: i32, %arg2: i32) -> (i32, i32) {
    %c0_i32 = arith.constant 0 : i32
    %c0_i32_0 = arith.constant 0 : i32
    return %c0_i32, %arg1 : i32, i32
  }
  func.func @transform_3(%arg0: i32, %arg1: i32, %arg2: i32) -> (i32, i32) {
    %c0_i32 = arith.constant 0 : i32
    %c0_i32_0 = arith.constant 0 : i32
    return %c0_i32, %arg1 : i32, i32
  }
  func.func @transform_4(%arg0: i32, %arg1: i32, %arg2: i32) -> (i32, i32) {
    %c0_i32 = arith.constant 0 : i32
    return %arg0, %arg1 : i32, i32
  }
}

module attributes {stable_mosaic.version = 11 : i64} {
  func.func @_fused_matmul_kernel(%arg0: i32, %arg1: i32, %arg2: i32, %arg3: memref<256x4xf32, #tpu.memory_space<vmem>>, %arg4: memref<4x8xf32, #tpu.memory_space<vmem>>, %arg5: memref<1x8xf32, #tpu.memory_space<vmem>>, %arg6: memref<1x8xf32, #tpu.memory_space<vmem>>, %arg7: memref<256x8xf32, #tpu.memory_space<vmem>>) attributes {dimension_semantics = [#tpu.dimension_semantics<parallel>, #tpu.dimension_semantics<parallel>, #tpu.dimension_semantics<arbitrary>], iteration_bounds = array<i64: 2, 1, 1>, scalar_prefetch = 0 : i64, scratch_operands = 0 : i64, tpu.core_type = #tpu.core_type<tc>, window_params = [{transform_indices = @transform_0, window_bounds = array<i64: 256, 4>}, {transform_indices = @transform_1, window_bounds = array<i64: 4, 8>}, {transform_indices = @transform_2, window_bounds = array<i64: 1, 8>}, {transform_indices = @transform_3, window_bounds = array<i64: 1, 8>}, {transform_indices = @transform_4, window_bounds = array<i64: 256, 8>}]} {
    %c0 = arith.constant 0 : index
    %c0_0 = arith.constant 0 : index
    %0 = vector.load %arg3[%c0, %c0_0] : memref<256x4xf32, #tpu.memory_space<vmem>>, vector<256x4xf32>
    %c0_1 = arith.constant 0 : index
    %c0_2 = arith.constant 0 : index
    %1 = vector.load %arg4[%c0_1, %c0_2] : memref<4x8xf32, #tpu.memory_space<vmem>>, vector<4x8xf32>
    %cst = arith.constant dense<0.000000e+00> : vector<256x8xf32>
    %2 = tpu.matmul %0, %1, %cst {dimension_numbers = #tpu.dot_dimension_numbers<[1], [0], [0], [1], [0, 0, 1, 1], [], []>} : vector<256x4xf32>, vector<4x8xf32>, vector<256x8xf32> -> vector<256x8xf32>
    %c0_3 = arith.constant 0 : index
    %c0_4 = arith.constant 0 : index
    %3 = vector.load %arg5[%c0_3, %c0_4] : memref<1x8xf32, #tpu.memory_space<vmem>>, vector<1x8xf32>
    %4 = vector.broadcast %3 : vector<1x8xf32> to vector<256x8xf32>
    %5 = arith.mulf %2, %4 : vector<256x8xf32>
    %c0_5 = arith.constant 0 : index
    %c0_6 = arith.constant 0 : index
    %6 = vector.load %arg6[%c0_5, %c0_6] : memref<1x8xf32, #tpu.memory_space<vmem>>, vector<1x8xf32>
    %7 = vector.broadcast %6 : vector<1x8xf32> to vector<256x8xf32>
    %8 = arith.addf %5, %7 : vector<256x8xf32>
    %c0_7 = arith.constant 0 : index
    %c0_8 = arith.constant 0 : index
    %9 = vector.load %arg7[%c0_7, %c0_8] : memref<256x8xf32, #tpu.memory_space<vmem>>, vector<256x8xf32>
    tpu.vector_store %arg7[%c0_7, %c0_8], %8 {strides = array<i32>} : memref<256x8xf32, #tpu.memory_space<vmem>>, vector<256x8xf32>,
    return
  }
  func.func @transform_0(%arg0: i32, %arg1: i32, %arg2: i32) -> (i32, i32) {
    %c0_i32 = arith.constant 0 : i32
    return %arg0, %arg2 : i32, i32
  }
  func.func @transform_1(%arg0: i32, %arg1: i32, %arg2: i32) -> (i32, i32) {
    %c0_i32 = arith.constant 0 : i32
    return %arg2, %arg1 : i32, i32
  }
  func.func @transform_2(%arg0: i32, %arg1: i32, %arg2: i32) -> (i32, i32) {
    %c0_i32 = arith.constant 0 : i32
    %c0_i32_0 = arith.constant 0 : i32
    return %c0_i32, %arg1 : i32, i32
  }
  func.func @transform_3(%arg0: i32, %arg1: i32, %arg2: i32) -> (i32, i32) {
    %c0_i32 = arith.constant 0 : i32
    %c0_i32_0 = arith.constant 0 : i32
    return %c0_i32, %arg1 : i32, i32
  }
  func.func @transform_4(%arg0: i32, %arg1: i32, %arg2: i32) -> (i32, i32) {
    %c0_i32 = arith.constant 0 : i32
    return %arg0, %arg1 : i32, i32
  }
}

module attributes {stable_mosaic.version = 11 : i64} {
  func.func @_fused_matmul_kernel(%arg0: i32, %arg1: i32, %arg2: i32, %arg3: memref<256x72xf32, #tpu.memory_space<vmem>>, %arg4: memref<72x8xf32, #tpu.memory_space<vmem>>, %arg5: memref<1x8xf32, #tpu.memory_space<vmem>>, %arg6: memref<1x8xf32, #tpu.memory_space<vmem>>, %arg7: memref<256x8xf32, #tpu.memory_space<vmem>>, %arg8: memref<256x8xf32, #tpu.memory_space<vmem>>) attributes {dimension_semantics = [#tpu.dimension_semantics<parallel>, #tpu.dimension_semantics<parallel>, #tpu.dimension_semantics<arbitrary>], iteration_bounds = array<i64: 2, 1, 1>, scalar_prefetch = 0 : i64, scratch_operands = 0 : i64, tpu.core_type = #tpu.core_type<tc>, window_params = [{transform_indices = @transform_0, window_bounds = array<i64: 256, 72>}, {transform_indices = @transform_1, window_bounds = array<i64: 72, 8>}, {transform_indices = @transform_2, window_bounds = array<i64: 1, 8>}, {transform_indices = @transform_3, window_bounds = array<i64: 1, 8>}, {transform_indices = @transform_4, window_bounds = array<i64: 256, 8>}, {transform_indices = @transform_5, window_bounds = array<i64: 256, 8>}]} {
    %c0 = arith.constant 0 : index
    %c0_0 = arith.constant 0 : index
    %0 = vector.load %arg3[%c0, %c0_0] : memref<256x72xf32, #tpu.memory_space<vmem>>, vector<256x72xf32>
    %c0_1 = arith.constant 0 : index
    %c0_2 = arith.constant 0 : index
    %1 = vector.load %arg4[%c0_1, %c0_2] : memref<72x8xf32, #tpu.memory_space<vmem>>, vector<72x8xf32>
    %cst = arith.constant dense<0.000000e+00> : vector<256x8xf32>
    %2 = tpu.matmul %0, %1, %cst {dimension_numbers = #tpu.dot_dimension_numbers<[1], [0], [0], [1], [0, 0, 1, 1], [], []>} : vector<256x72xf32>, vector<72x8xf32>, vector<256x8xf32> -> vector<256x8xf32>
    %c0_3 = arith.constant 0 : index
    %c0_4 = arith.constant 0 : index
    %3 = vector.load %arg5[%c0_3, %c0_4] : memref<1x8xf32, #tpu.memory_space<vmem>>, vector<1x8xf32>
    %4 = vector.broadcast %3 : vector<1x8xf32> to vector<256x8xf32>
    %5 = arith.mulf %2, %4 : vector<256x8xf32>
    %c0_5 = arith.constant 0 : index
    %c0_6 = arith.constant 0 : index
    %6 = vector.load %arg6[%c0_5, %c0_6] : memref<1x8xf32, #tpu.memory_space<vmem>>, vector<1x8xf32>
    %7 = vector.broadcast %6 : vector<1x8xf32> to vector<256x8xf32>
    %8 = arith.addf %5, %7 : vector<256x8xf32>
    %c0_7 = arith.constant 0 : index
    %c0_8 = arith.constant 0 : index
    %9 = vector.load %arg7[%c0_7, %c0_8] : memref<256x8xf32, #tpu.memory_space<vmem>>, vector<256x8xf32>
    %10 = arith.addf %8, %9 : vector<256x8xf32>
    %cst_9 = arith.constant 0.000000e+00 : f32
    %11 = vector.broadcast %cst_9 : f32 to vector<256x8xf32>
    %12 = arith.maximumf %10, %11 : vector<256x8xf32>
    %c0_10 = arith.constant 0 : index
    %c0_11 = arith.constant 0 : index
    %13 = vector.load %arg8[%c0_10, %c0_11] : memref<256x8xf32, #tpu.memory_space<vmem>>, vector<256x8xf32>
    tpu.vector_store %arg8[%c0_10, %c0_11], %12 {strides = array<i32>} : memref<256x8xf32, #tpu.memory_space<vmem>>, vector<256x8xf32>,
    return
  }
  func.func @transform_0(%arg0: i32, %arg1: i32, %arg2: i32) -> (i32, i32) {
    %c0_i32 = arith.constant 0 : i32
    return %arg0, %arg2 : i32, i32
  }
  func.func @transform_1(%arg0: i32, %arg1: i32, %arg2: i32) -> (i32, i32) {
    %c0_i32 = arith.constant 0 : i32
    return %arg2, %arg1 : i32, i32
  }
  func.func @transform_2(%arg0: i32, %arg1: i32, %arg2: i32) -> (i32, i32) {
    %c0_i32 = arith.constant 0 : i32
    %c0_i32_0 = arith.constant 0 : i32
    return %c0_i32, %arg1 : i32, i32
  }
  func.func @transform_3(%arg0: i32, %arg1: i32, %arg2: i32) -> (i32, i32) {
    %c0_i32 = arith.constant 0 : i32
    %c0_i32_0 = arith.constant 0 : i32
    return %c0_i32, %arg1 : i32, i32
  }
  func.func @transform_4(%arg0: i32, %arg1: i32, %arg2: i32) -> (i32, i32) {
    %c0_i32 = arith.constant 0 : i32
    return %arg0, %arg1 : i32, i32
  }
  func.func @transform_5(%arg0: i32, %arg1: i32, %arg2: i32) -> (i32, i32) {
    %c0_i32 = arith.constant 0 : i32
    return %arg0, %arg1 : i32, i32
  }
}

</mosaic_0001>

<bundles_post_ra>
// kernel: basic_block_forward.3
= control target key start
LH: loop header
LB: loop body
LE: loop exit
PB: predicated region body
PF: predicated region fallthrough
CT: control target
= control target key end

     0   :  { %s1160_s15 = smov 0   ;;  %s1162_s16 = smov 0   ;;  %s1425_s0 = inlined_call_operand.vmem [shape: f32[512,36], index: 0, kind: input, shape index: {}]   ;;  %s1426_s1 = inlined_call_operand.vmem [shape: f32[36,8], index: 1, kind: input, shape index: {}]   ;;  %s1427_s2 = inlined_call_operand.vmem [shape: f32[1,8], index: 2, kind: input, shape index: {}]   ;;  %s1428_s3 = inlined_call_operand.vmem [shape: f32[1,8], index: 3, kind: input, shape index: {}]   ;;  %s1429_s4 = inlined_call_operand.vmem [shape: f32[512,8], index: 4, kind: output, shape index: {}]  }
   0x1   :  { %s1164_s17 = smov 0  }
   0x2 LB: > { %s33_s18 = sadd.s32 1, %s1129_s16  ;;  %p936_p0 = scmp.ge.s32.totalorder %s1133_s17, 1  ;;  %s1133_s17 = sphi %s1164_s17, %s14_s17   ;;  %s1129_s16 = sphi %s1162_s16, %s1431_s16   ;;  %s1125_s15 = sphi %s1160_s15, %s1430_s15  }
   0x3   : > { %p35_p1 = scmp.ge.s32.totalorder %s33_s18, 2  ;;  %p221_p2 = scmp.lt.s32.totalorder %s1133_s17, 3 }
   0x5   : > { %s1433_s18 = smov (%p35_p1, %s33_s18), 0  ;;  %p222_p3 = pnand %p936_p0, %p221_p2 }
   0x6   : > { %v332_v0 = vld [vmem:[%s1426_s1] sm:$0xff] (!%p222_p3)  ;;  %v333_v1 = vld [vmem:[%s1426_s1 + $0x8] sm:$0xff] (!%p222_p3)  ;;  %v334_v2 = vld [vmem:[%s1426_s1 + $0x10] sm:$0xff] (!%p222_p3)  ;;  %s937_s25 = sshll.u32 (!%p222_p3), %s1125_s15, 5  ;;  %vm434_vm0 = vcmask (!%p222_p3), 1043456   ;;  %vm337_vm1 = vcmask (!%p222_p3), 293888  }
   0x7   : > { %225 = sbr.rel (%p222_p3) target bundleno = 268 (0x10c), region = 36  ;;  %v1073_v3 = vpack.c.bf16 (!%p222_p3), %v333_v1, %v332_v0  ;;  %v335_v4 = vld [vmem:[%s1426_s1 + $0x18] sm:$0xff] (!%p222_p3)  ;;  %p268_p4 = scmp.lt.s32.totalorder (!%p222_p3), %s937_s25, 63  ;;  %v336_v6 = vld [vmem:[%s1426_s1 + $0x20] sm:$0xf] (!%p222_p3)  ;;  %vm773_vm2 = vcmask (!%p222_p3), 64512  }
   0x8   : > { %v1077_v5 = vpack.c.bf16 (!%p222_p3), %v335_v4, %v334_v2  ;;  %v1274_v39 = vld [vmem:[%s1427_s2] ss:$0 sm:$0xff] (!%p222_p3) }
   0x9   : > { %1074 = vmatprep.subr.bf16.mxu0 (!%p222_p3), %v1073_v3  ;;  %1081 = vmatprep.subr.bf16.mxu1 (!%p222_p3), %v1073_v3  ;;  %v1279_v41 = vld [vmem:[%s1428_s3] ss:$0 sm:$0xff] (!%p222_p3) }
   0xa   : > { %1076 = vmatpush3.bf16.msra.mxu0 (!%p222_p3), %v1073_v3  ;;  %1084 = vmatpush3.bf16.msra.mxu1 (!%p222_p3), %v1073_v3 }
   0xb   : > { %1078 = vmatprep.subr.bf16.mxu0 (!%p222_p3), %v1077_v5  ;;  %1082 = vmatprep.subr.bf16.mxu1 (!%p222_p3), %v1077_v5 }
   0xe   : > { %s1435_s25 = smov (!%p268_p4, %s937_s25), 63  ;;  %1080 = vmatpush3.bf16.msra.mxu0 %v1077_v5  ;;  %1085 = vmatpush3.bf16.msra.mxu1 %v1077_v5 }
   0xf   : > { %s938_s28 = sshll.u32 %s1435_s25, 3  ;;  %1023 = vmatprep.subr.msk.mxu0 %vm434_vm0, %v336_v6  ;;  %1083 = vmatprep.subr.msk.mxu1 %vm434_vm0, %v336_v6 }
  0x10   : > { %s1201_s7 = scalar_lea.vmem %s1425_s0, %s938_s28  ;;  %s1292_s14 = scalar_lea.vmem %s1429_s4, %s938_s28 }
  0x11   : > { %v300_v7 = vld [vmem:[%s1201_s7] sm:$0xff]  ;;  %v301_v9 = vld [vmem:[%s1201_s7 + $0x8] sm:$0xff]  ;;  %v302_v11 = vld [vmem:[%s1201_s7 + $0x10] sm:$0xff] }
  0x12   : > { %v316_v8 = vld [vmem:[%s1201_s7 + $0x80] sm:$0xff]  ;;  %1025 = vmatprep.mubr.msk.f32.mxu0 %vm337_vm1, %v300_v7  ;;  %v317_v10 = vld [vmem:[%s1201_s7 + $0x88] sm:$0xff]  ;;  %v318_v12 = vld [vmem:[%s1201_s7 + $0x90] sm:$0xff]  ;;  %1024 = vmatpush3.msk.msra.mxu0 %vm434_vm0, %v336_v6 }
  0x13   : > { %1049 = vmatprep.mubr.msk.f32.mxu1 %vm337_vm1, %v316_v8  ;;  %1086 = vmatpush3.msk.msra.mxu1 %vm434_vm0, %v336_v6  ;;  %v303_v13 = vld [vmem:[%s1201_s7 + $0x18] sm:$0xff]  ;;  %v304_v15 = vld [vmem:[%s1201_s7 + $0x20] sm:$0xff]  ;;  %v305_v17 = vld [vmem:[%s1201_s7 + $0x28] sm:$0xff] }
  0x14   : > { %1026 = vmatmul.mubr.msk.f32.vlgmr.msra.gmra.mrb[0].mxu0 %vm337_vm1, %v301_v9  ;;  %1050 = vmatmul.mubr.msk.f32.vlgmr.msra.gmra.mrb[0].mxu1 %vm337_vm1, %v317_v10  ;;  %v319_v14 = vld [vmem:[%s1201_s7 + $0x98] sm:$0xff]  ;;  %v320_v16 = vld [vmem:[%s1201_s7 + $0xa0] sm:$0xff]  ;;  %v321_v18 = vld [vmem:[%s1201_s7 + $0xa8] sm:$0xff] }
  0x15   : > { %1028 = vmatprep.mubr.msk.f32.mxu0 %vm337_vm1, %v302_v11  ;;  %1052 = vmatprep.mubr.msk.f32.mxu1 %vm337_vm1, %v318_v12  ;;  %v306_v19 = vld [vmem:[%s1201_s7 + $0x30] sm:$0xff]  ;;  %v307_v21 = vld [vmem:[%s1201_s7 + $0x38] sm:$0xff]  ;;  %v308_v23 = vld [vmem:[%s1201_s7 + $0x40] sm:$0xff] }
  0x16   : > { %v322_v20 = vld [vmem:[%s1201_s7 + $0xb0] sm:$0xff]  ;;  %v323_v22 = vld [vmem:[%s1201_s7 + $0xb8] sm:$0xff]  ;;  %v324_v24 = vld [vmem:[%s1201_s7 + $0xc0] sm:$0xff] }
  0x17   : > { %v309_v25 = vld [vmem:[%s1201_s7 + $0x48] sm:$0xff]  ;;  %v310_v27 = vld [vmem:[%s1201_s7 + $0x50] sm:$0xff]  ;;  %v311_v29 = vld [vmem:[%s1201_s7 + $0x58] sm:$0xff] }
  0x18   : > { %1029 = vmatmul.mubr.msk.f32.gmra.mrb[2].mxu0 %vm337_vm1, %v303_v13  ;;  %1053 = vmatmul.mubr.msk.f32.gmra.mrb[2].mxu1 %vm337_vm1, %v319_v14  ;;  %v325_v26 = vld [vmem:[%s1201_s7 + $0xc8] sm:$0xff]  ;;  %v326_v28 = vld [vmem:[%s1201_s7 + $0xd0] sm:$0xff]  ;;  %v327_v30 = vld [vmem:[%s1201_s7 + $0xd8] sm:$0xff] }
  0x19   : > { %1031 = vmatprep.mubr.msk.f32.mxu0 %vm337_vm1, %v304_v15  ;;  %1055 = vmatprep.mubr.msk.f32.mxu1 %vm337_vm1, %v320_v16  ;;  %v312_v31 = vld [vmem:[%s1201_s7 + $0x60] sm:$0xff]  ;;  %v313_v33 = vld [vmem:[%s1201_s7 + $0x68] sm:$0xff]  ;;  %v314_v35 = vld [vmem:[%s1201_s7 + $0x70] sm:$0xff] }
  0x1a   : > { %v328_v32 = vld [vmem:[%s1201_s7 + $0xe0] sm:$0xff]  ;;  %v329_v34 = vld [vmem:[%s1201_s7 + $0xe8] sm:$0xff]  ;;  %v330_v36 = vld [vmem:[%s1201_s7 + $0xf0] sm:$0xff] }
  0x1b   : > { %v315_v37 = vld [vmem:[%s1201_s7 + $0x78] sm:$0xff] }
  0x1c   : > { %1032 = vmatmul.mubr.msk.f32.gmra.mrb[4].mxu0 %vm337_vm1, %v305_v17  ;;  %1056 = vmatmul.mubr.msk.f32.gmra.mrb[4].mxu1 %vm337_vm1, %v321_v18  ;;  %v331_v38 = vld [vmem:[%s1201_s7 + $0xf8] sm:$0xff] }
  0x1d   : > { %1034 = vmatprep.mubr.msk.f32.mxu0 %vm337_vm1, %v306_v19  ;;  %1058 = vmatprep.mubr.msk.f32.mxu1 %vm337_vm1, %v322_v20 }
  0x20   : > { %1035 = vmatmul.mubr.msk.f32.gmra.mrb[6].mxu0 %vm337_vm1, %v307_v21  ;;  %1059 = vmatmul.mubr.msk.f32.gmra.mrb[6].mxu1 %vm337_vm1, %v323_v22 }
  0x21   : > { %1037 = vmatprep.mubr.msk.f32.mxu0 %vm337_vm1, %v308_v23  ;;  %1061 = vmatprep.mubr.msk.f32.mxu1 %vm337_vm1, %v324_v24 }
  0x24   : > { %1038 = vmatmul.mubr.msk.f32.gmra.mrb[8].mxu0 %vm337_vm1, %v309_v25  ;;  %1062 = vmatmul.mubr.msk.f32.gmra.mrb[8].mxu1 %vm337_vm1, %v325_v26 }
  0x25   : > { %1040 = vmatprep.mubr.msk.f32.mxu0 %vm337_vm1, %v310_v27  ;;  %1064 = vmatprep.mubr.msk.f32.mxu1 %vm337_vm1, %v326_v28 }
  0x28   : > { %1041 = vmatmul.mubr.msk.f32.gmra.mrb[10].mxu0 %vm337_vm1, %v311_v29  ;;  %1065 = vmatmul.mubr.msk.f32.gmra.mrb[10].mxu1 %vm337_vm1, %v327_v30 }
  0x29   : > { %1043 = vmatprep.mubr.msk.f32.mxu0 %vm337_vm1, %v312_v31  ;;  %1067 = vmatprep.mubr.msk.f32.mxu1 %vm337_vm1, %v328_v32 }
  0x2c   : > { %1044 = vmatmul.mubr.msk.f32.gmra.mrb[12].mxu0 %vm337_vm1, %v313_v33  ;;  %1068 = vmatmul.mubr.msk.f32.gmra.mrb[12].mxu1 %vm337_vm1, %v329_v34 }
  0x2d   : > { %1046 = vmatprep.mubr.msk.f32.mxu0 %vm337_vm1, %v314_v35  ;;  %1070 = vmatprep.mubr.msk.f32.mxu1 %vm337_vm1, %v330_v36 }
  0x30   : > { %1047 = vmatmul.mubr.msk.f32.gmra.mrb[14].mxu0 %vm337_vm1, %v315_v37  ;;  %1071 = vmatmul.mubr.msk.f32.gmra.mrb[14].mxu1 %vm337_vm1, %v331_v38 }
  0xe7   : > { %v1027_v40 = vpop.f32.mrb[0].mxu0  ;;  %v1051_v42 = vpop.f32.mrb[0].mxu1 }
  0xe8   : > { %v671_v43 = vmul.f32 %v1027_v40, %v1274_v39  ;;  %v687_v44 = vmul.f32 %v1051_v42, %v1274_v39  ;;  %v504_v45 = vpop.f32.mrb[1].mxu0  ;;  %v584_v46 = vpop.f32.mrb[1].mxu1 }
  0xe9   : > { %v670_v47 = vmul.f32 %v1274_v39, %v504_v45  ;;  %v686_v48 = vmul.f32 %v1274_v39, %v584_v46 }
  0xea   : > { %v710_v49 = vadd.f32 %v1279_v41, %v671_v43  ;;  %v726_v50 = vadd.f32 %v1279_v41, %v687_v44 }
  0xeb   : > { %v709_v51 = vadd.f32 %v1279_v41, %v670_v47  ;;  %v725_v52 = vadd.f32 %v1279_v41, %v686_v48  ;;  %v1030_v53 = vpop.f32.mrb[2].mxu0  ;;  %v1054_v54 = vpop.f32.mrb[2].mxu1 }
  0xec   : > { %v742_v55 = vmax.f32 %v710_v49, 0.0  ;;  %v758_v56 = vmax.f32 %v726_v50, 0.0  ;;  %v673_v57 = vmul.f32 %v1030_v53, %v1274_v39  ;;  %v689_v58 = vmul.f32 %v1054_v54, %v1274_v39  ;;  %v514_v59 = vpop.f32.mrb[3].mxu0  ;;  %v594_v60 = vpop.f32.mrb[3].mxu1 }
  0xed   : > { %v741_v61 = vmax.f32 %v709_v51, 0.0  ;;  %v757_v62 = vmax.f32 %v725_v52, 0.0  ;;  %v672_v63 = vmul.f32 %v1274_v39, %v514_v59  ;;  %v688_v0 = vmul.f32 %v1274_v39, %v594_v60 }
  0xee   : > { %775 = vst.msk [vmem:[%s1292_s14 + $0x8] sm:$0xff] %vm773_vm2, %v742_v55  ;;  %791 = vst.msk [vmem:[%s1292_s14 + $0x88] sm:$0xff] %vm773_vm2, %v758_v56  ;;  %v712_v1 = vadd.f32 %v1279_v41, %v673_v57  ;;  %v728_v2 = vadd.f32 %v1279_v41, %v689_v58 }
  0xef   : > { %774 = vst.msk [vmem:[%s1292_s14] sm:$0xff] %vm773_vm2, %v741_v61  ;;  %790 = vst.msk [vmem:[%s1292_s14 + $0x80] sm:$0xff] %vm773_vm2, %v757_v62  ;;  %v711_v3 = vadd.f32 %v1279_v41, %v672_v63  ;;  %v727_v4 = vadd.f32 %v1279_v41, %v688_v0  ;;  %v1033_v5 = vpop.f32.mrb[4].mxu0  ;;  %v1057_v6 = vpop.f32.mrb[4].mxu1 }
  0xf0   : > { %v744_v7 = vmax.f32 %v712_v1, 0.0  ;;  %v760_v8 = vmax.f32 %v728_v2, 0.0  ;;  %v675_v9 = vmul.f32 %v1033_v5, %v1274_v39  ;;  %v691_v10 = vmul.f32 %v1057_v6, %v1274_v39  ;;  %v524_v11 = vpop.f32.mrb[5].mxu0  ;;  %v604_v12 = vpop.f32.mrb[5].mxu1 }
  0xf1   : > { %v743_v13 = vmax.f32 %v711_v3, 0.0  ;;  %v759_v14 = vmax.f32 %v727_v4, 0.0  ;;  %v674_v15 = vmul.f32 %v1274_v39, %v524_v11  ;;  %v690_v16 = vmul.f32 %v1274_v39, %v604_v12 }
  0xf2   : > { %777 = vst.msk [vmem:[%s1292_s14 + $0x18] sm:$0xff] %vm773_vm2, %v744_v7  ;;  %793 = vst.msk [vmem:[%s1292_s14 + $0x98] sm:$0xff] %vm773_vm2, %v760_v8  ;;  %v714_v17 = vadd.f32 %v1279_v41, %v675_v9  ;;  %v730_v18 = vadd.f32 %v1279_v41, %v691_v10 }
  0xf3   : > { %776 = vst.msk [vmem:[%s1292_s14 + $0x10] sm:$0xff] %vm773_vm2, %v743_v13  ;;  %792 = vst.msk [vmem:[%s1292_s14 + $0x90] sm:$0xff] %vm773_vm2, %v759_v14  ;;  %v713_v19 = vadd.f32 %v1279_v41, %v674_v15  ;;  %v729_v20 = vadd.f32 %v1279_v41, %v690_v16  ;;  %v1036_v21 = vpop.f32.mrb[6].mxu0  ;;  %v1060_v22 = vpop.f32.mrb[6].mxu1 }
  0xf4   : > { %v746_v23 = vmax.f32 %v714_v17, 0.0  ;;  %v762_v24 = vmax.f32 %v730_v18, 0.0  ;;  %v677_v25 = vmul.f32 %v1036_v21, %v1274_v39  ;;  %v693_v26 = vmul.f32 %v1060_v22, %v1274_v39  ;;  %v534_v27 = vpop.f32.mrb[7].mxu0  ;;  %v614_v28 = vpop.f32.mrb[7].mxu1 }
  0xf5   : > { %v745_v29 = vmax.f32 %v713_v19, 0.0  ;;  %v761_v30 = vmax.f32 %v729_v20, 0.0  ;;  %v676_v31 = vmul.f32 %v1274_v39, %v534_v27  ;;  %v692_v32 = vmul.f32 %v1274_v39, %v614_v28 }
  0xf6   : > { %779 = vst.msk [vmem:[%s1292_s14 + $0x28] sm:$0xff] %vm773_vm2, %v746_v23  ;;  %795 = vst.msk [vmem:[%s1292_s14 + $0xa8] sm:$0xff] %vm773_vm2, %v762_v24  ;;  %v716_v33 = vadd.f32 %v1279_v41, %v677_v25  ;;  %v732_v34 = vadd.f32 %v1279_v41, %v693_v26 }
  0xf7   : > { %778 = vst.msk [vmem:[%s1292_s14 + $0x20] sm:$0xff] %vm773_vm2, %v745_v29  ;;  %794 = vst.msk [vmem:[%s1292_s14 + $0xa0] sm:$0xff] %vm773_vm2, %v761_v30  ;;  %v715_v35 = vadd.f32 %v1279_v41, %v676_v31  ;;  %v731_v36 = vadd.f32 %v1279_v41, %v692_v32  ;;  %v1039_v37 = vpop.f32.mrb[8].mxu0  ;;  %v1063_v38 = vpop.f32.mrb[8].mxu1 }
  0xf8   : > { %v748_v40 = vmax.f32 %v716_v33, 0.0  ;;  %v764_v42 = vmax.f32 %v732_v34, 0.0  ;;  %v679_v43 = vmul.f32 %v1039_v37, %v1274_v39  ;;  %v695_v44 = vmul.f32 %v1063_v38, %v1274_v39  ;;  %v544_v45 = vpop.f32.mrb[9].mxu0  ;;  %v624_v46 = vpop.f32.mrb[9].mxu1 }
  0xf9   : > { %v747_v47 = vmax.f32 %v715_v35, 0.0  ;;  %v763_v48 = vmax.f32 %v731_v36, 0.0  ;;  %v678_v49 = vmul.f32 %v1274_v39, %v544_v45  ;;  %v694_v50 = vmul.f32 %v1274_v39, %v624_v46 }
  0xfa   : > { %781 = vst.msk [vmem:[%s1292_s14 + $0x38] sm:$0xff] %vm773_vm2, %v748_v40  ;;  %797 = vst.msk [vmem:[%s1292_s14 + $0xb8] sm:$0xff] %vm773_vm2, %v764_v42  ;;  %v718_v51 = vadd.f32 %v1279_v41, %v679_v43  ;;  %v734_v52 = vadd.f32 %v1279_v41, %v695_v44 }
  0xfb   : > { %780 = vst.msk [vmem:[%s1292_s14 + $0x30] sm:$0xff] %vm773_vm2, %v747_v47  ;;  %796 = vst.msk [vmem:[%s1292_s14 + $0xb0] sm:$0xff] %vm773_vm2, %v763_v48  ;;  %v717_v53 = vadd.f32 %v1279_v41, %v678_v49  ;;  %v733_v54 = vadd.f32 %v1279_v41, %v694_v50  ;;  %v1042_v55 = vpop.f32.mrb[10].mxu0  ;;  %v1066_v56 = vpop.f32.mrb[10].mxu1 }
  0xfc   : > { %v750_v57 = vmax.f32 %v718_v51, 0.0  ;;  %v766_v58 = vmax.f32 %v734_v52, 0.0  ;;  %v681_v59 = vmul.f32 %v1042_v55, %v1274_v39  ;;  %v697_v60 = vmul.f32 %v1066_v56, %v1274_v39  ;;  %v554_v61 = vpop.f32.mrb[11].mxu0  ;;  %v634_v62 = vpop.f32.mrb[11].mxu1 }
  0xfd   : > { %v749_v63 = vmax.f32 %v717_v53, 0.0  ;;  %v765_v0 = vmax.f32 %v733_v54, 0.0  ;;  %v680_v1 = vmul.f32 %v1274_v39, %v554_v61  ;;  %v696_v2 = vmul.f32 %v1274_v39, %v634_v62 }
  0xfe   : > { %783 = vst.msk [vmem:[%s1292_s14 + $0x48] sm:$0xff] %vm773_vm2, %v750_v57  ;;  %799 = vst.msk [vmem:[%s1292_s14 + $0xc8] sm:$0xff] %vm773_vm2, %v766_v58  ;;  %v720_v3 = vadd.f32 %v1279_v41, %v681_v59  ;;  %v736_v4 = vadd.f32 %v1279_v41, %v697_v60 }
  0xff   : > { %782 = vst.msk [vmem:[%s1292_s14 + $0x40] sm:$0xff] %vm773_vm2, %v749_v63  ;;  %798 = vst.msk [vmem:[%s1292_s14 + $0xc0] sm:$0xff] %vm773_vm2, %v765_v0  ;;  %v719_v5 = vadd.f32 %v1279_v41, %v680_v1  ;;  %v735_v6 = vadd.f32 %v1279_v41, %v696_v2  ;;  %v1045_v7 = vpop.f32.mrb[12].mxu0  ;;  %v1069_v8 = vpop.f32.mrb[12].mxu1 }
 0x100   : > { %v752_v9 = vmax.f32 %v720_v3, 0.0  ;;  %v768_v10 = vmax.f32 %v736_v4, 0.0  ;;  %v683_v11 = vmul.f32 %v1045_v7, %v1274_v39  ;;  %v699_v12 = vmul.f32 %v1069_v8, %v1274_v39  ;;  %v564_v13 = vpop.f32.mrb[13].mxu0  ;;  %v644_v14 = vpop.f32.mrb[13].mxu1 }
 0x101   : > { %v751_v15 = vmax.f32 %v719_v5, 0.0  ;;  %v767_v16 = vmax.f32 %v735_v6, 0.0  ;;  %v682_v17 = vmul.f32 %v1274_v39, %v564_v13  ;;  %v698_v18 = vmul.f32 %v1274_v39, %v644_v14 }
 0x102   : > { %785 = vst.msk [vmem:[%s1292_s14 + $0x58] sm:$0xff] %vm773_vm2, %v752_v9  ;;  %801 = vst.msk [vmem:[%s1292_s14 + $0xd8] sm:$0xff] %vm773_vm2, %v768_v10  ;;  %v722_v19 = vadd.f32 %v1279_v41, %v683_v11  ;;  %v738_v20 = vadd.f32 %v1279_v41, %v699_v12 }
 0x103   : > { %784 = vst.msk [vmem:[%s1292_s14 + $0x50] sm:$0xff] %vm773_vm2, %v751_v15  ;;  %800 = vst.msk [vmem:[%s1292_s14 + $0xd0] sm:$0xff] %vm773_vm2, %v767_v16  ;;  %v721_v21 = vadd.f32 %v1279_v41, %v682_v17  ;;  %v737_v22 = vadd.f32 %v1279_v41, %v698_v18  ;;  %v1048_v23 = vpop.f32.mrb[14].mxu0  ;;  %v1072_v24 = vpop.f32.mrb[14].mxu1 }
 0x104   : > { %v754_v25 = vmax.f32 %v722_v19, 0.0  ;;  %v770_v26 = vmax.f32 %v738_v20, 0.0  ;;  %v685_v27 = vmul.f32 %v1048_v23, %v1274_v39  ;;  %v701_v28 = vmul.f32 %v1072_v24, %v1274_v39  ;;  %v574_v29 = vpop.f32.mrb[15].mxu0  ;;  %v654_v30 = vpop.f32.mrb[15].mxu1 }
 0x105   : > { %v753_v31 = vmax.f32 %v721_v21, 0.0  ;;  %v769_v32 = vmax.f32 %v737_v22, 0.0  ;;  %v684_v33 = vmul.f32 %v1274_v39, %v574_v29  ;;  %v700_v34 = vmul.f32 %v1274_v39, %v654_v30 }
 0x106   : > { %787 = vst.msk [vmem:[%s1292_s14 + $0x68] sm:$0xff] %vm773_vm2, %v754_v25  ;;  %803 = vst.msk [vmem:[%s1292_s14 + $0xe8] sm:$0xff] %vm773_vm2, %v770_v26  ;;  %v724_v35 = vadd.f32 %v1279_v41, %v685_v27  ;;  %v740_v36 = vadd.f32 %v1279_v41, %v701_v28 }
 0x107   : > { %786 = vst.msk [vmem:[%s1292_s14 + $0x60] sm:$0xff] %vm773_vm2, %v753_v31  ;;  %802 = vst.msk [vmem:[%s1292_s14 + $0xe0] sm:$0xff] %vm773_vm2, %v769_v32  ;;  %v723_v37 = vadd.f32 %v1279_v41, %v684_v33  ;;  %v739_v38 = vadd.f32 %v1279_v41, %v700_v34 }
 0x108   : > { %v756_v40 = vmax.f32 %v724_v35, 0.0  ;;  %v772_v42 = vmax.f32 %v740_v36, 0.0 }
 0x109   : > { %v755_v39 = vmax.f32 %v723_v37, 0.0  ;;  %v771_v43 = vmax.f32 %v739_v38, 0.0 }
 0x10a   : > { %789 = vst.msk [vmem:[%s1292_s14 + $0x78] sm:$0xff] %vm773_vm2, %v756_v40  ;;  %805 = vst.msk [vmem:[%s1292_s14 + $0xf8] sm:$0xff] %vm773_vm2, %v772_v42 }
 0x10b   : > { %788 = vst.msk [vmem:[%s1292_s14 + $0x70] sm:$0xff] %vm773_vm2, %v755_v39  ;;  %804 = vst.msk [vmem:[%s1292_s14 + $0xf0] sm:$0xff] %vm773_vm2, %v771_v43 }
 0x10c PF: > { %s14_s17 = sadd.s32 1, %s1133_s17   ;;  %s1430_s15 = smov %s1129_s16 }
 0x10d   : > { %p11_p5 = scmp.ge.s32.totalorder %s14_s17, 4   ;;  %s1431_s16 = smov %s1433_s18 }
 0x10f   :  { %13 = sbr.rel (!%p11_p5) target bundleno = 2 (0x2), region = 75 }

// kernel: basic_block_forward.4
= control target key start
LH: loop header
LB: loop body
LE: loop exit
PB: predicated region body
PF: predicated region fallthrough
CT: control target
= control target key end

     0   :  { %s1095_s15 = smov 0   ;;  %s1097_s16 = smov 0   ;;  %s1344_s0 = inlined_call_operand.vmem [shape: f32[512,4], index: 0, kind: input, shape index: {}]   ;;  %s1345_s1 = inlined_call_operand.vmem [shape: f32[4,8], index: 1, kind: input, shape index: {}]   ;;  %s1346_s2 = inlined_call_operand.vmem [shape: f32[1,8], index: 2, kind: input, shape index: {}]   ;;  %s1347_s3 = inlined_call_operand.vmem [shape: f32[1,8], index: 3, kind: input, shape index: {}]   ;;  %s1348_s4 = inlined_call_operand.vmem [shape: f32[512,8], index: 4, kind: output, shape index: {}]  }
   0x1   :  { %s1099_s17 = smov 0  }
   0x2 LB: > { %s33_s18 = sadd.s32 1, %s1064_s16  ;;  %p895_p0 = scmp.ge.s32.totalorder %s1068_s17, 1  ;;  %s1068_s17 = sphi %s1099_s17, %s14_s17   ;;  %s1064_s16 = sphi %s1097_s16, %s1350_s16   ;;  %s1060_s15 = sphi %s1095_s15, %s1349_s15  }
   0x3   : > { %p35_p1 = scmp.ge.s32.totalorder %s33_s18, 2  ;;  %p219_p2 = scmp.lt.s32.totalorder %s1068_s17, 3 }
   0x5   : > { %s1352_s18 = smov (%p35_p1, %s33_s18), 0  ;;  %p220_p3 = pnand %p895_p0, %p219_p2 }
   0x6   : > { %v327_v0 = vld [vmem:[%s1345_s1] sm:$0xf] (!%p220_p3)  ;;  %vm425_vm0 = vcmask (!%p220_p3), 1043456   ;;  %s896_s21 = sshll.u32 (!%p220_p3), %s1060_s15, 5  ;;  %vm328_vm1 = vcmask (!%p220_p3), 31744   ;;  %vm732_vm2 = vcmask (!%p220_p3), 64512  }
   0x7   : > { %223 = sbr.rel (%p220_p3) target bundleno = 266 (0x10a), region = 36  ;;  %970 = vmatprep.subr.msk.mxu0 (!%p220_p3), %vm425_vm0, %v327_v0  ;;  %1020 = vmatprep.subr.msk.mxu1 (!%p220_p3), %vm425_vm0, %v327_v0  ;;  %p265_p4 = scmp.lt.s32.totalorder (!%p220_p3), %s896_s21, 63  ;;  %v1193_v33 = vld [vmem:[%s1346_s2] ss:$0 sm:$0xff] (!%p220_p3) }
   0x8   : > { %971 = vmatpush3.msk.msra.mxu0 (!%p220_p3), %vm425_vm0, %v327_v0  ;;  %1021 = vmatpush3.msk.msra.mxu1 (!%p220_p3), %vm425_vm0, %v327_v0  ;;  %v1198_v35 = vld [vmem:[%s1347_s3] ss:$0 sm:$0xff] (!%p220_p3) }
   0xe   : > { %s1354_s21 = smov (!%p265_p4, %s896_s21), 63 }
   0xf   : > { %s897_s22 = sshll.u32 %s1354_s21, 3 }
  0x10   : > { %s1124_s25 = scalar_lea.vmem %s1344_s0, %s897_s22  ;;  %s1207_s6 = scalar_lea.vmem %s1348_s4, %s897_s22 }
  0x11   : > { %v295_v1 = vld [vmem:[%s1124_s25] sm:$0xff]  ;;  %v296_v3 = vld [vmem:[%s1124_s25 + $0x8] sm:$0xff]  ;;  %v297_v5 = vld [vmem:[%s1124_s25 + $0x10] sm:$0xff] }
  0x12   : > { %v311_v2 = vld [vmem:[%s1124_s25 + $0x80] sm:$0xff]  ;;  %972 = vmatprep.mubr.msk.f32.mxu0 %vm328_vm1, %v295_v1  ;;  %v312_v4 = vld [vmem:[%s1124_s25 + $0x88] sm:$0xff]  ;;  %v313_v6 = vld [vmem:[%s1124_s25 + $0x90] sm:$0xff] }
  0x13   : > { %996 = vmatprep.mubr.msk.f32.mxu1 %vm328_vm1, %v311_v2  ;;  %973 = vmatmul.mubr.msk.f32.vlgmr.msra.gmra.mrb[0].mxu0 %vm328_vm1, %v296_v3  ;;  %v298_v7 = vld [vmem:[%s1124_s25 + $0x18] sm:$0xff]  ;;  %v299_v9 = vld [vmem:[%s1124_s25 + $0x20] sm:$0xff]  ;;  %v300_v11 = vld [vmem:[%s1124_s25 + $0x28] sm:$0xff] }
  0x14   : > { %997 = vmatmul.mubr.msk.f32.vlgmr.msra.gmra.mrb[0].mxu1 %vm328_vm1, %v312_v4  ;;  %975 = vmatprep.mubr.msk.f32.mxu0 %vm328_vm1, %v297_v5  ;;  %v314_v8 = vld [vmem:[%s1124_s25 + $0x98] sm:$0xff]  ;;  %v315_v10 = vld [vmem:[%s1124_s25 + $0xa0] sm:$0xff]  ;;  %v316_v12 = vld [vmem:[%s1124_s25 + $0xa8] sm:$0xff] }
  0x15   : > { %999 = vmatprep.mubr.msk.f32.mxu1 %vm328_vm1, %v313_v6  ;;  %v301_v13 = vld [vmem:[%s1124_s25 + $0x30] sm:$0xff]  ;;  %v302_v15 = vld [vmem:[%s1124_s25 + $0x38] sm:$0xff]  ;;  %v303_v17 = vld [vmem:[%s1124_s25 + $0x40] sm:$0xff] }
  0x16   : > { %v317_v14 = vld [vmem:[%s1124_s25 + $0xb0] sm:$0xff]  ;;  %v318_v16 = vld [vmem:[%s1124_s25 + $0xb8] sm:$0xff]  ;;  %v319_v18 = vld [vmem:[%s1124_s25 + $0xc0] sm:$0xff] }
  0x17   : > { %976 = vmatmul.mubr.msk.f32.gmra.mrb[2].mxu0 %vm328_vm1, %v298_v7  ;;  %v304_v19 = vld [vmem:[%s1124_s25 + $0x48] sm:$0xff]  ;;  %v305_v21 = vld [vmem:[%s1124_s25 + $0x50] sm:$0xff]  ;;  %v306_v23 = vld [vmem:[%s1124_s25 + $0x58] sm:$0xff] }
  0x18   : > { %1000 = vmatmul.mubr.msk.f32.gmra.mrb[2].mxu1 %vm328_vm1, %v314_v8  ;;  %978 = vmatprep.mubr.msk.f32.mxu0 %vm328_vm1, %v299_v9  ;;  %v320_v20 = vld [vmem:[%s1124_s25 + $0xc8] sm:$0xff]  ;;  %v321_v22 = vld [vmem:[%s1124_s25 + $0xd0] sm:$0xff]  ;;  %v322_v24 = vld [vmem:[%s1124_s25 + $0xd8] sm:$0xff] }
  0x19   : > { %1002 = vmatprep.mubr.msk.f32.mxu1 %vm328_vm1, %v315_v10  ;;  %v307_v25 = vld [vmem:[%s1124_s25 + $0x60] sm:$0xff]  ;;  %v308_v27 = vld [vmem:[%s1124_s25 + $0x68] sm:$0xff]  ;;  %v309_v29 = vld [vmem:[%s1124_s25 + $0x70] sm:$0xff] }
  0x1a   : > { %v323_v26 = vld [vmem:[%s1124_s25 + $0xe0] sm:$0xff]  ;;  %v324_v28 = vld [vmem:[%s1124_s25 + $0xe8] sm:$0xff]  ;;  %v325_v30 = vld [vmem:[%s1124_s25 + $0xf0] sm:$0xff] }
  0x1b   : > { %979 = vmatmul.mubr.msk.f32.gmra.mrb[4].mxu0 %vm328_vm1, %v300_v11  ;;  %v310_v31 = vld [vmem:[%s1124_s25 + $0x78] sm:$0xff] }
  0x1c   : > { %1003 = vmatmul.mubr.msk.f32.gmra.mrb[4].mxu1 %vm328_vm1, %v316_v12  ;;  %981 = vmatprep.mubr.msk.f32.mxu0 %vm328_vm1, %v301_v13  ;;  %v326_v32 = vld [vmem:[%s1124_s25 + $0xf8] sm:$0xff] }
  0x1d   : > { %1005 = vmatprep.mubr.msk.f32.mxu1 %vm328_vm1, %v317_v14 }
  0x1f   : > { %982 = vmatmul.mubr.msk.f32.gmra.mrb[6].mxu0 %vm328_vm1, %v302_v15 }
  0x20   : > { %1006 = vmatmul.mubr.msk.f32.gmra.mrb[6].mxu1 %vm328_vm1, %v318_v16  ;;  %984 = vmatprep.mubr.msk.f32.mxu0 %vm328_vm1, %v303_v17 }
  0x21   : > { %1008 = vmatprep.mubr.msk.f32.mxu1 %vm328_vm1, %v319_v18 }
  0x23   : > { %985 = vmatmul.mubr.msk.f32.gmra.mrb[8].mxu0 %vm328_vm1, %v304_v19 }
  0x24   : > { %1009 = vmatmul.mubr.msk.f32.gmra.mrb[8].mxu1 %vm328_vm1, %v320_v20  ;;  %987 = vmatprep.mubr.msk.f32.mxu0 %vm328_vm1, %v305_v21 }
  0x25   : > { %1011 = vmatprep.mubr.msk.f32.mxu1 %vm328_vm1, %v321_v22 }
  0x27   : > { %988 = vmatmul.mubr.msk.f32.gmra.mrb[10].mxu0 %vm328_vm1, %v306_v23 }
  0x28   : > { %1012 = vmatmul.mubr.msk.f32.gmra.mrb[10].mxu1 %vm328_vm1, %v322_v24  ;;  %990 = vmatprep.mubr.msk.f32.mxu0 %vm328_vm1, %v307_v25 }
  0x29   : > { %1014 = vmatprep.mubr.msk.f32.mxu1 %vm328_vm1, %v323_v26 }
  0x2b   : > { %991 = vmatmul.mubr.msk.f32.gmra.mrb[12].mxu0 %vm328_vm1, %v308_v27 }
  0x2c   : > { %1015 = vmatmul.mubr.msk.f32.gmra.mrb[12].mxu1 %vm328_vm1, %v324_v28  ;;  %993 = vmatprep.mubr.msk.f32.mxu0 %vm328_vm1, %v309_v29 }
  0x2d   : > { %1017 = vmatprep.mubr.msk.f32.mxu1 %vm328_vm1, %v325_v30 }
  0x2f   : > { %994 = vmatmul.mubr.msk.f32.gmra.mrb[14].mxu0 %vm328_vm1, %v310_v31 }
  0x30   : > { %1018 = vmatmul.mubr.msk.f32.gmra.mrb[14].mxu1 %vm328_vm1, %v326_v32 }
  0xe6   : > { %v974_v34 = vpop.f32.mrb[0].mxu0 }
  0xe7   : > { %v998_v36 = vpop.f32.mrb[0].mxu1  ;;  %v662_v37 = vmul.f32 %v974_v34, %v1193_v33  ;;  %v495_v39 = vpop.f32.mrb[1].mxu0 }
  0xe8   : > { %v678_v38 = vmul.f32 %v998_v36, %v1193_v33  ;;  %v575_v40 = vpop.f32.mrb[1].mxu1  ;;  %v661_v41 = vmul.f32 %v1193_v33, %v495_v39 }
  0xe9   : > { %v677_v42 = vmul.f32 %v1193_v33, %v575_v40  ;;  %v701_v43 = vadd.f32 %v1198_v35, %v662_v37 }
  0xea   : > { %v717_v44 = vadd.f32 %v1198_v35, %v678_v38  ;;  %v700_v45 = vadd.f32 %v1198_v35, %v661_v41  ;;  %v977_v47 = vpop.f32.mrb[2].mxu0 }
  0xeb   : > { %v716_v46 = vadd.f32 %v1198_v35, %v677_v42  ;;  %v1001_v48 = vpop.f32.mrb[2].mxu1  ;;  %734 = vst.msk [vmem:[%s1207_s6 + $0x8] sm:$0xff] %vm732_vm2, %v701_v43  ;;  %v664_v49 = vmul.f32 %v977_v47, %v1193_v33  ;;  %v505_v51 = vpop.f32.mrb[3].mxu0 }
  0xec   : > { %750 = vst.msk [vmem:[%s1207_s6 + $0x88] sm:$0xff] %vm732_vm2, %v717_v44  ;;  %v680_v50 = vmul.f32 %v1001_v48, %v1193_v33  ;;  %v585_v52 = vpop.f32.mrb[3].mxu1  ;;  %733 = vst.msk [vmem:[%s1207_s6] sm:$0xff] %vm732_vm2, %v700_v45  ;;  %v663_v53 = vmul.f32 %v1193_v33, %v505_v51 }
  0xed   : > { %749 = vst.msk [vmem:[%s1207_s6 + $0x80] sm:$0xff] %vm732_vm2, %v716_v46  ;;  %v679_v54 = vmul.f32 %v1193_v33, %v585_v52  ;;  %v703_v55 = vadd.f32 %v1198_v35, %v664_v49 }
  0xee   : > { %v719_v56 = vadd.f32 %v1198_v35, %v680_v50  ;;  %v702_v57 = vadd.f32 %v1198_v35, %v663_v53  ;;  %v980_v59 = vpop.f32.mrb[4].mxu0 }
  0xef   : > { %v718_v58 = vadd.f32 %v1198_v35, %v679_v54  ;;  %v1004_v60 = vpop.f32.mrb[4].mxu1  ;;  %736 = vst.msk [vmem:[%s1207_s6 + $0x18] sm:$0xff] %vm732_vm2, %v703_v55  ;;  %v666_v61 = vmul.f32 %v980_v59, %v1193_v33  ;;  %v515_v63 = vpop.f32.mrb[5].mxu0 }
  0xf0   : > { %752 = vst.msk [vmem:[%s1207_s6 + $0x98] sm:$0xff] %vm732_vm2, %v719_v56  ;;  %v682_v62 = vmul.f32 %v1004_v60, %v1193_v33  ;;  %v595_v0 = vpop.f32.mrb[5].mxu1  ;;  %735 = vst.msk [vmem:[%s1207_s6 + $0x10] sm:$0xff] %vm732_vm2, %v702_v57  ;;  %v665_v1 = vmul.f32 %v1193_v33, %v515_v63 }
  0xf1   : > { %751 = vst.msk [vmem:[%s1207_s6 + $0x90] sm:$0xff] %vm732_vm2, %v718_v58  ;;  %v681_v2 = vmul.f32 %v1193_v33, %v595_v0  ;;  %v705_v3 = vadd.f32 %v1198_v35, %v666_v61 }
  0xf2   : > { %v721_v4 = vadd.f32 %v1198_v35, %v682_v62  ;;  %v704_v5 = vadd.f32 %v1198_v35, %v665_v1  ;;  %v983_v7 = vpop.f32.mrb[6].mxu0 }
  0xf3   : > { %v720_v6 = vadd.f32 %v1198_v35, %v681_v2  ;;  %v1007_v8 = vpop.f32.mrb[6].mxu1  ;;  %738 = vst.msk [vmem:[%s1207_s6 + $0x28] sm:$0xff] %vm732_vm2, %v705_v3  ;;  %v668_v9 = vmul.f32 %v983_v7, %v1193_v33  ;;  %v525_v11 = vpop.f32.mrb[7].mxu0 }
  0xf4   : > { %754 = vst.msk [vmem:[%s1207_s6 + $0xa8] sm:$0xff] %vm732_vm2, %v721_v4  ;;  %v684_v10 = vmul.f32 %v1007_v8, %v1193_v33  ;;  %v605_v12 = vpop.f32.mrb[7].mxu1  ;;  %737 = vst.msk [vmem:[%s1207_s6 + $0x20] sm:$0xff] %vm732_vm2, %v704_v5  ;;  %v667_v13 = vmul.f32 %v1193_v33, %v525_v11 }
  0xf5   : > { %753 = vst.msk [vmem:[%s1207_s6 + $0xa0] sm:$0xff] %vm732_vm2, %v720_v6  ;;  %v683_v14 = vmul.f32 %v1193_v33, %v605_v12  ;;  %v707_v15 = vadd.f32 %v1198_v35, %v668_v9 }
  0xf6   : > { %v723_v16 = vadd.f32 %v1198_v35, %v684_v10  ;;  %v706_v17 = vadd.f32 %v1198_v35, %v667_v13  ;;  %v986_v19 = vpop.f32.mrb[8].mxu0 }
  0xf7   : > { %v722_v18 = vadd.f32 %v1198_v35, %v683_v14  ;;  %v1010_v20 = vpop.f32.mrb[8].mxu1  ;;  %740 = vst.msk [vmem:[%s1207_s6 + $0x38] sm:$0xff] %vm732_vm2, %v707_v15  ;;  %v670_v21 = vmul.f32 %v986_v19, %v1193_v33  ;;  %v535_v23 = vpop.f32.mrb[9].mxu0 }
  0xf8   : > { %756 = vst.msk [vmem:[%s1207_s6 + $0xb8] sm:$0xff] %vm732_vm2, %v723_v16  ;;  %v686_v22 = vmul.f32 %v1010_v20, %v1193_v33  ;;  %v615_v24 = vpop.f32.mrb[9].mxu1  ;;  %739 = vst.msk [vmem:[%s1207_s6 + $0x30] sm:$0xff] %vm732_vm2, %v706_v17  ;;  %v669_v25 = vmul.f32 %v1193_v33, %v535_v23 }
  0xf9   : > { %755 = vst.msk [vmem:[%s1207_s6 + $0xb0] sm:$0xff] %vm732_vm2, %v722_v18  ;;  %v685_v26 = vmul.f32 %v1193_v33, %v615_v24  ;;  %v709_v27 = vadd.f32 %v1198_v35, %v670_v21 }
  0xfa   : > { %v725_v28 = vadd.f32 %v1198_v35, %v686_v22  ;;  %v708_v29 = vadd.f32 %v1198_v35, %v669_v25  ;;  %v989_v31 = vpop.f32.mrb[10].mxu0 }
  0xfb   : > { %v724_v30 = vadd.f32 %v1198_v35, %v685_v26  ;;  %v1013_v32 = vpop.f32.mrb[10].mxu1  ;;  %742 = vst.msk [vmem:[%s1207_s6 + $0x48] sm:$0xff] %vm732_vm2, %v709_v27  ;;  %v672_v34 = vmul.f32 %v989_v31, %v1193_v33  ;;  %v545_v37 = vpop.f32.mrb[11].mxu0 }
  0xfc   : > { %758 = vst.msk [vmem:[%s1207_s6 + $0xc8] sm:$0xff] %vm732_vm2, %v725_v28  ;;  %v688_v36 = vmul.f32 %v1013_v32, %v1193_v33  ;;  %v625_v38 = vpop.f32.mrb[11].mxu1  ;;  %741 = vst.msk [vmem:[%s1207_s6 + $0x40] sm:$0xff] %vm732_vm2, %v708_v29  ;;  %v671_v39 = vmul.f32 %v1193_v33, %v545_v37 }
  0xfd   : > { %757 = vst.msk [vmem:[%s1207_s6 + $0xc0] sm:$0xff] %vm732_vm2, %v724_v30  ;;  %v687_v40 = vmul.f32 %v1193_v33, %v625_v38  ;;  %v711_v41 = vadd.f32 %v1198_v35, %v672_v34 }
  0xfe   : > { %v727_v42 = vadd.f32 %v1198_v35, %v688_v36  ;;  %v710_v43 = vadd.f32 %v1198_v35, %v671_v39  ;;  %v992_v45 = vpop.f32.mrb[12].mxu0 }
  0xff   : > { %v726_v44 = vadd.f32 %v1198_v35, %v687_v40  ;;  %v1016_v46 = vpop.f32.mrb[12].mxu1  ;;  %744 = vst.msk [vmem:[%s1207_s6 + $0x58] sm:$0xff] %vm732_vm2, %v711_v41  ;;  %v674_v47 = vmul.f32 %v992_v45, %v1193_v33  ;;  %v555_v49 = vpop.f32.mrb[13].mxu0 }
 0x100   : > { %760 = vst.msk [vmem:[%s1207_s6 + $0xd8] sm:$0xff] %vm732_vm2, %v727_v42  ;;  %v690_v48 = vmul.f32 %v1016_v46, %v1193_v33  ;;  %v635_v50 = vpop.f32.mrb[13].mxu1  ;;  %743 = vst.msk [vmem:[%s1207_s6 + $0x50] sm:$0xff] %vm732_vm2, %v710_v43  ;;  %v673_v51 = vmul.f32 %v1193_v33, %v555_v49 }
 0x101   : > { %759 = vst.msk [vmem:[%s1207_s6 + $0xd0] sm:$0xff] %vm732_vm2, %v726_v44  ;;  %v689_v52 = vmul.f32 %v1193_v33, %v635_v50  ;;  %v713_v53 = vadd.f32 %v1198_v35, %v674_v47 }
 0x102   : > { %v729_v54 = vadd.f32 %v1198_v35, %v690_v48  ;;  %v712_v55 = vadd.f32 %v1198_v35, %v673_v51  ;;  %v995_v57 = vpop.f32.mrb[14].mxu0 }
 0x103   : > { %v728_v56 = vadd.f32 %v1198_v35, %v689_v52  ;;  %v1019_v58 = vpop.f32.mrb[14].mxu1  ;;  %746 = vst.msk [vmem:[%s1207_s6 + $0x68] sm:$0xff] %vm732_vm2, %v713_v53  ;;  %v676_v59 = vmul.f32 %v995_v57, %v1193_v33  ;;  %v565_v61 = vpop.f32.mrb[15].mxu0 }
 0x104   : > { %762 = vst.msk [vmem:[%s1207_s6 + $0xe8] sm:$0xff] %vm732_vm2, %v729_v54  ;;  %v692_v60 = vmul.f32 %v1019_v58, %v1193_v33  ;;  %v645_v62 = vpop.f32.mrb[15].mxu1  ;;  %745 = vst.msk [vmem:[%s1207_s6 + $0x60] sm:$0xff] %vm732_vm2, %v712_v55  ;;  %v675_v63 = vmul.f32 %v1193_v33, %v565_v61 }
 0x105   : > { %761 = vst.msk [vmem:[%s1207_s6 + $0xe0] sm:$0xff] %vm732_vm2, %v728_v56  ;;  %v691_v0 = vmul.f32 %v1193_v33, %v645_v62  ;;  %v715_v1 = vadd.f32 %v1198_v35, %v676_v59 }
 0x106   : > { %v731_v2 = vadd.f32 %v1198_v35, %v692_v60  ;;  %v714_v3 = vadd.f32 %v1198_v35, %v675_v63 }
 0x107   : > { %v730_v4 = vadd.f32 %v1198_v35, %v691_v0  ;;  %748 = vst.msk [vmem:[%s1207_s6 + $0x78] sm:$0xff] %vm732_vm2, %v715_v1 }
 0x108   : > { %764 = vst.msk [vmem:[%s1207_s6 + $0xf8] sm:$0xff] %vm732_vm2, %v731_v2  ;;  %747 = vst.msk [vmem:[%s1207_s6 + $0x70] sm:$0xff] %vm732_vm2, %v714_v3 }
 0x109   : > { %763 = vst.msk [vmem:[%s1207_s6 + $0xf0] sm:$0xff] %vm732_vm2, %v730_v4 }
 0x10a PF: > { %s14_s17 = sadd.s32 1, %s1068_s17   ;;  %s1349_s15 = smov %s1064_s16 }
 0x10b   : > { %p11_p5 = scmp.ge.s32.totalorder %s14_s17, 4   ;;  %s1350_s16 = smov %s1352_s18 }
 0x10d   :  { %13 = sbr.rel (!%p11_p5) target bundleno = 2 (0x2), region = 75 }

// kernel: basic_block_forward.5
= control target key start
LH: loop header
LB: loop body
LE: loop exit
PB: predicated region body
PF: predicated region fallthrough
CT: control target
= control target key end

     0   :  { %s1329_s18 = smov 0   ;;  %s1331_s19 = smov 0   ;;  %s1637_s0 = inlined_call_operand.vmem [shape: f32[512,72], index: 0, kind: input, shape index: {}]   ;;  %s1638_s1 = inlined_call_operand.vmem [shape: f32[72,8], index: 1, kind: input, shape index: {}]   ;;  %s1639_s2 = inlined_call_operand.vmem [shape: f32[1,8], index: 2, kind: input, shape index: {}]   ;;  %s1640_s3 = inlined_call_operand.vmem [shape: f32[1,8], index: 3, kind: input, shape index: {}]   ;;  %s1641_s4 = inlined_call_operand.vmem [shape: f32[512,8], index: 4, kind: input, shape index: {}]   ;;  %s1642_s5 = inlined_call_operand.vmem [shape: f32[512,8], index: 5, kind: output, shape index: {}]  }
   0x1   :  { %s1333_s20 = smov 0  }
   0x2 LB: > { %s34_s21 = sadd.s32 1, %s1293_s19  ;;  %p1075_p0 = scmp.ge.s32.totalorder %s1297_s20, 1  ;;  %s1297_s20 = sphi %s1333_s20, %s15_s20   ;;  %s1293_s19 = sphi %s1331_s19, %s1644_s19   ;;  %s1289_s18 = sphi %s1329_s18, %s1643_s18  }
   0x3   : > { %p36_p1 = scmp.ge.s32.totalorder %s34_s21, 2  ;;  %p262_p2 = scmp.lt.s32.totalorder %s1297_s20, 3 }
   0x5   : > { %s1646_s21 = smov (%p36_p1, %s34_s21), 0  ;;  %p263_p3 = pnand %p1075_p0, %p262_p2 }
   0x6   : > { %v392_v0 = vld [vmem:[%s1638_s1] sm:$0xff] (!%p263_p3)  ;;  %v393_v1 = vld [vmem:[%s1638_s1 + $0x8] sm:$0xff] (!%p263_p3)  ;;  %v394_v2 = vld [vmem:[%s1638_s1 + $0x10] sm:$0xff] (!%p263_p3)  ;;  %s1076_s28 = sshll.u32 (!%p263_p3), %s1289_s18, 5  ;;  %vm401_vm0 = vcmask (!%p263_p3), 588800   ;;  %vm897_vm1 = vcmask (!%p263_p3), 64512  }
   0x7   : > { %266 = sbr.rel (%p263_p3) target bundleno = 280 (0x118), region = 40  ;;  %v1225_v3 = vpack.c.bf16 (!%p263_p3), %v393_v1, %v392_v0  ;;  %v395_v4 = vld [vmem:[%s1638_s1 + $0x18] sm:$0xff] (!%p263_p3)  ;;  %p319_p4 = scmp.lt.s32.totalorder (!%p263_p3), %s1076_s28, 63  ;;  %v396_v6 = vld [vmem:[%s1638_s1 + $0x20] sm:$0xff] (!%p263_p3)  ;;  %v397_v7 = vld [vmem:[%s1638_s1 + $0x28] sm:$0xff] (!%p263_p3) }
   0x8   : > { %v1229_v5 = vpack.c.bf16 (!%p263_p3), %v395_v4, %v394_v2  ;;  %v1233_v8 = vpack.c.bf16 (!%p263_p3), %v397_v7, %v396_v6  ;;  %v398_v9 = vld [vmem:[%s1638_s1 + $0x30] sm:$0xff] (!%p263_p3)  ;;  %v399_v10 = vld [vmem:[%s1638_s1 + $0x38] sm:$0xff] (!%p263_p3)  ;;  %v400_v14 = vld [vmem:[%s1638_s1 + $0x40] sm:$0xff] (!%p263_p3) }
   0x9   : > { %1226 = vmatprep.subr.bf16.mxu0 (!%p263_p3), %v1225_v3  ;;  %1241 = vmatprep.subr.bf16.mxu1 (!%p263_p3), %v1225_v3  ;;  %v1237_v13 = vpack.c.bf16 (!%p263_p3), %v399_v10, %v398_v9  ;;  %v1449_v45 = vld [vmem:[%s1639_s2] ss:$0 sm:$0xff] (!%p263_p3) }
   0xa   : > { %1228 = vmatpush3.bf16.msra.mxu0 (!%p263_p3), %v1225_v3  ;;  %1246 = vmatpush3.bf16.msra.mxu1 (!%p263_p3), %v1225_v3  ;;  %v1460_v47 = vld [vmem:[%s1640_s3] ss:$0 sm:$0xff] (!%p263_p3) }
   0xb   : > { %1230 = vmatprep.subr.bf16.mxu0 (!%p263_p3), %v1229_v5  ;;  %1242 = vmatprep.subr.bf16.mxu1 (!%p263_p3), %v1229_v5 }
   0xe   : > { %s1648_s28 = smov (!%p319_p4, %s1076_s28), 63  ;;  %1232 = vmatpush3.bf16.msra.mxu0 %v1229_v5  ;;  %1247 = vmatpush3.bf16.msra.mxu1 %v1229_v5 }
   0xf   : > { %s1365_s10 = sshll.u32 %s1648_s28, 3  ;;  %1234 = vmatprep.subr.bf16.mxu0 %v1233_v8  ;;  %1243 = vmatprep.subr.bf16.mxu1 %v1233_v8 }
  0x10   : > { %s1377_s17 = scalar_lea.vmem %s1637_s0, %s1365_s10  ;;  %s1455_s27 = scalar_lea.vmem %s1641_s4, %s1365_s10 }
  0x11   : > { %v360_v11 = vld [vmem:[%s1377_s17] sm:$0xff]  ;;  %v361_v15 = vld [vmem:[%s1377_s17 + $0x8] sm:$0xff]  ;;  %v362_v17 = vld [vmem:[%s1377_s17 + $0x10] sm:$0xff]  ;;  %s1480_s7 = scalar_lea.vmem %s1642_s5, %s1365_s10 }
  0x12   : > { %v376_v12 = vld [vmem:[%s1377_s17 + $0x80] sm:$0xff]  ;;  %1177 = vmatprep.mubr.msk.f32.mxu0 %vm401_vm0, %v360_v11  ;;  %1236 = vmatpush3.bf16.msra.mxu0 %v1233_v8  ;;  %v377_v16 = vld [vmem:[%s1377_s17 + $0x88] sm:$0xff]  ;;  %v378_v18 = vld [vmem:[%s1377_s17 + $0x90] sm:$0xff] }
  0x13   : > { %1201 = vmatprep.mubr.msk.f32.mxu1 %vm401_vm0, %v376_v12  ;;  %1248 = vmatpush3.bf16.msra.mxu1 %v1233_v8  ;;  %v363_v19 = vld [vmem:[%s1377_s17 + $0x18] sm:$0xff]  ;;  %v364_v21 = vld [vmem:[%s1377_s17 + $0x20] sm:$0xff]  ;;  %v365_v23 = vld [vmem:[%s1377_s17 + $0x28] sm:$0xff] }
  0x14   : > { %1238 = vmatprep.subr.bf16.mxu0 %v1237_v13  ;;  %1244 = vmatprep.subr.bf16.mxu1 %v1237_v13  ;;  %v379_v20 = vld [vmem:[%s1377_s17 + $0x98] sm:$0xff]  ;;  %v380_v22 = vld [vmem:[%s1377_s17 + $0xa0] sm:$0xff]  ;;  %v381_v24 = vld [vmem:[%s1377_s17 + $0xa8] sm:$0xff] }
  0x15   : > { %v366_v25 = vld [vmem:[%s1377_s17 + $0x30] sm:$0xff]  ;;  %v367_v27 = vld [vmem:[%s1377_s17 + $0x38] sm:$0xff]  ;;  %v368_v29 = vld [vmem:[%s1377_s17 + $0x40] sm:$0xff] }
  0x16   : > { %1240 = vmatpush3.bf16.msra.mxu0 %v1237_v13  ;;  %v382_v26 = vld [vmem:[%s1377_s17 + $0xb0] sm:$0xff]  ;;  %v383_v28 = vld [vmem:[%s1377_s17 + $0xb8] sm:$0xff]  ;;  %v384_v30 = vld [vmem:[%s1377_s17 + $0xc0] sm:$0xff] }
  0x17   : > { %1249 = vmatpush3.bf16.msra.mxu1 %v1237_v13  ;;  %1175 = vmatprep.subr.mxu0 %v400_v14  ;;  %v369_v31 = vld [vmem:[%s1377_s17 + $0x48] sm:$0xff]  ;;  %v370_v33 = vld [vmem:[%s1377_s17 + $0x50] sm:$0xff]  ;;  %v371_v35 = vld [vmem:[%s1377_s17 + $0x58] sm:$0xff] }
  0x18   : > { %1245 = vmatprep.subr.mxu1 %v400_v14  ;;  %v385_v32 = vld [vmem:[%s1377_s17 + $0xc8] sm:$0xff]  ;;  %v386_v34 = vld [vmem:[%s1377_s17 + $0xd0] sm:$0xff]  ;;  %v387_v36 = vld [vmem:[%s1377_s17 + $0xd8] sm:$0xff] }
  0x19   : > { %v372_v37 = vld [vmem:[%s1377_s17 + $0x60] sm:$0xff]  ;;  %v373_v39 = vld [vmem:[%s1377_s17 + $0x68] sm:$0xff]  ;;  %v374_v41 = vld [vmem:[%s1377_s17 + $0x70] sm:$0xff] }
  0x1a   : > { %1176 = vmatpush3.msra.mxu0 %v400_v14  ;;  %v388_v38 = vld [vmem:[%s1377_s17 + $0xe0] sm:$0xff]  ;;  %v389_v40 = vld [vmem:[%s1377_s17 + $0xe8] sm:$0xff]  ;;  %v390_v42 = vld [vmem:[%s1377_s17 + $0xf0] sm:$0xff] }
  0x1b   : > { %1250 = vmatpush3.msra.mxu1 %v400_v14  ;;  %1178 = vmatmul.mubr.msk.f32.vlgmr.msra.gmra.mrb[0].mxu0 %vm401_vm0, %v361_v15  ;;  %v375_v43 = vld [vmem:[%s1377_s17 + $0x78] sm:$0xff]  ;;  %v802_v53 = vld [vmem:[%s1455_s27 + $0x8] sm:$0xff]  ;;  %v801_v59 = vld [vmem:[%s1455_s27] sm:$0xff] }
  0x1c   : > { %1202 = vmatmul.mubr.msk.f32.vlgmr.msra.gmra.mrb[0].mxu1 %vm401_vm0, %v377_v16  ;;  %1180 = vmatprep.mubr.msk.f32.mxu0 %vm401_vm0, %v362_v17  ;;  %v391_v44 = vld [vmem:[%s1377_s17 + $0xf8] sm:$0xff]  ;;  %v818_v54 = vld [vmem:[%s1455_s27 + $0x88] sm:$0xff]  ;;  %v817_v60 = vld [vmem:[%s1455_s27 + $0x80] sm:$0xff] }
  0x1d   : > { %1204 = vmatprep.mubr.msk.f32.mxu1 %vm401_vm0, %v378_v18  ;;  %v804_v9 = vld [vmem:[%s1455_s27 + $0x18] sm:$0xff]  ;;  %v803_v17 = vld [vmem:[%s1455_s27 + $0x10] sm:$0xff] }
  0x1e   : > { %v820_v10 = vld [vmem:[%s1455_s27 + $0x98] sm:$0xff]  ;;  %v819_v18 = vld [vmem:[%s1455_s27 + $0x90] sm:$0xff] }
  0x1f   : > { %1181 = vmatmul.mubr.msk.f32.gmra.mrb[2].mxu0 %vm401_vm0, %v363_v19 }
  0x20   : > { %1205 = vmatmul.mubr.msk.f32.gmra.mrb[2].mxu1 %vm401_vm0, %v379_v20  ;;  %1183 = vmatprep.mubr.msk.f32.mxu0 %vm401_vm0, %v364_v21 }
  0x21   : > { %1207 = vmatprep.mubr.msk.f32.mxu1 %vm401_vm0, %v380_v22 }
  0x23   : > { %1184 = vmatmul.mubr.msk.f32.gmra.mrb[4].mxu0 %vm401_vm0, %v365_v23 }
  0x24   : > { %1208 = vmatmul.mubr.msk.f32.gmra.mrb[4].mxu1 %vm401_vm0, %v381_v24  ;;  %1186 = vmatprep.mubr.msk.f32.mxu0 %vm401_vm0, %v366_v25 }
  0x25   : > { %1210 = vmatprep.mubr.msk.f32.mxu1 %vm401_vm0, %v382_v26 }
  0x27   : > { %1187 = vmatmul.mubr.msk.f32.gmra.mrb[6].mxu0 %vm401_vm0, %v367_v27 }
  0x28   : > { %1211 = vmatmul.mubr.msk.f32.gmra.mrb[6].mxu1 %vm401_vm0, %v383_v28  ;;  %1189 = vmatprep.mubr.msk.f32.mxu0 %vm401_vm0, %v368_v29 }
  0x29   : > { %1213 = vmatprep.mubr.msk.f32.mxu1 %vm401_vm0, %v384_v30 }
  0x2b   : > { %1190 = vmatmul.mubr.msk.f32.gmra.mrb[8].mxu0 %vm401_vm0, %v369_v31 }
  0x2c   : > { %1214 = vmatmul.mubr.msk.f32.gmra.mrb[8].mxu1 %vm401_vm0, %v385_v32  ;;  %1192 = vmatprep.mubr.msk.f32.mxu0 %vm401_vm0, %v370_v33  ;;  %v806_v33 = vld [vmem:[%s1455_s27 + $0x28] sm:$0xff] }
  0x2d   : > { %1216 = vmatprep.mubr.msk.f32.mxu1 %vm401_vm0, %v386_v34  ;;  %v822_v34 = vld [vmem:[%s1455_s27 + $0xa8] sm:$0xff] }
  0x2f   : > { %1193 = vmatmul.mubr.msk.f32.gmra.mrb[10].mxu0 %vm401_vm0, %v371_v35 }
  0x30   : > { %1217 = vmatmul.mubr.msk.f32.gmra.mrb[10].mxu1 %vm401_vm0, %v387_v36  ;;  %1195 = vmatprep.mubr.msk.f32.mxu0 %vm401_vm0, %v372_v37 }
  0x31   : > { %1219 = vmatprep.mubr.msk.f32.mxu1 %vm401_vm0, %v388_v38 }
  0x33   : > { %1196 = vmatmul.mubr.msk.f32.gmra.mrb[12].mxu0 %vm401_vm0, %v373_v39 }
  0x34   : > { %1220 = vmatmul.mubr.msk.f32.gmra.mrb[12].mxu1 %vm401_vm0, %v389_v40  ;;  %1198 = vmatprep.mubr.msk.f32.mxu0 %vm401_vm0, %v374_v41  ;;  %v805_v41 = vld [vmem:[%s1455_s27 + $0x20] sm:$0xff] }
  0x35   : > { %1222 = vmatprep.mubr.msk.f32.mxu1 %vm401_vm0, %v390_v42  ;;  %v821_v42 = vld [vmem:[%s1455_s27 + $0xa0] sm:$0xff] }
  0x37   : > { %1199 = vmatmul.mubr.msk.f32.gmra.mrb[14].mxu0 %vm401_vm0, %v375_v43 }
  0x38   : > { %1223 = vmatmul.mubr.msk.f32.gmra.mrb[14].mxu1 %vm401_vm0, %v391_v44 }
  0xee   : > { %v1179_v46 = vpop.f32.mrb[0].mxu0 }
  0xef   : > { %v1203_v48 = vpop.f32.mrb[0].mxu1  ;;  %v731_v49 = vmul.f32 %v1179_v46, %v1449_v45  ;;  %v564_v51 = vpop.f32.mrb[1].mxu0 }
  0xf0   : > { %v747_v50 = vmul.f32 %v1203_v48, %v1449_v45  ;;  %v644_v52 = vpop.f32.mrb[1].mxu1  ;;  %v730_v55 = vmul.f32 %v1449_v45, %v564_v51 }
  0xf1   : > { %v746_v56 = vmul.f32 %v1449_v45, %v644_v52  ;;  %v770_v57 = vadd.f32 %v1460_v47, %v731_v49 }
  0xf2   : > { %v786_v58 = vadd.f32 %v1460_v47, %v747_v50  ;;  %v769_v61 = vadd.f32 %v1460_v47, %v730_v55  ;;  %v1182_v63 = vpop.f32.mrb[2].mxu0 }
  0xf3   : > { %v785_v62 = vadd.f32 %v1460_v47, %v746_v56  ;;  %v1206_v0 = vpop.f32.mrb[2].mxu1  ;;  %v834_v1 = vadd.f32 %v802_v53, %v770_v57  ;;  %v733_v3 = vmul.f32 %v1182_v63, %v1449_v45  ;;  %v574_v5 = vpop.f32.mrb[3].mxu0 }
  0xf4   : > { %v850_v2 = vadd.f32 %v818_v54, %v786_v58  ;;  %v749_v4 = vmul.f32 %v1206_v0, %v1449_v45  ;;  %v654_v6 = vpop.f32.mrb[3].mxu1  ;;  %v833_v7 = vadd.f32 %v801_v59, %v769_v61  ;;  %v732_v11 = vmul.f32 %v1449_v45, %v574_v5  ;;  %v808_v59 = vld [vmem:[%s1455_s27 + $0x38] sm:$0xff] }
  0xf5   : > { %v849_v8 = vadd.f32 %v817_v60, %v785_v62  ;;  %v748_v12 = vmul.f32 %v1449_v45, %v654_v6  ;;  %v866_v13 = vmax.f32 %v834_v1, 0.0  ;;  %v772_v15 = vadd.f32 %v1460_v47, %v733_v3  ;;  %v824_v60 = vld [vmem:[%s1455_s27 + $0xb8] sm:$0xff]  ;;  %v807_v3 = vld [vmem:[%s1455_s27 + $0x30] sm:$0xff] }
  0xf6   : > { %v882_v14 = vmax.f32 %v850_v2, 0.0  ;;  %v788_v16 = vadd.f32 %v1460_v47, %v749_v4  ;;  %v865_v19 = vmax.f32 %v833_v7, 0.0  ;;  %v771_v21 = vadd.f32 %v1460_v47, %v732_v11  ;;  %v1185_v23 = vpop.f32.mrb[4].mxu0  ;;  %v823_v4 = vld [vmem:[%s1455_s27 + $0xb0] sm:$0xff] }
  0xf7   : > { %v881_v20 = vmax.f32 %v849_v8, 0.0  ;;  %v787_v22 = vadd.f32 %v1460_v47, %v748_v12  ;;  %v1209_v24 = vpop.f32.mrb[4].mxu1  ;;  %899 = vst.msk [vmem:[%s1480_s7 + $0x8] sm:$0xff] %vm897_vm1, %v866_v13  ;;  %v836_v25 = vadd.f32 %v804_v9, %v772_v15  ;;  %v735_v27 = vmul.f32 %v1185_v23, %v1449_v45  ;;  %v584_v29 = vpop.f32.mrb[5].mxu0 }
  0xf8   : > { %915 = vst.msk [vmem:[%s1480_s7 + $0x88] sm:$0xff] %vm897_vm1, %v882_v14  ;;  %v852_v26 = vadd.f32 %v820_v10, %v788_v16  ;;  %v751_v28 = vmul.f32 %v1209_v24, %v1449_v45  ;;  %v664_v30 = vpop.f32.mrb[5].mxu1  ;;  %898 = vst.msk [vmem:[%s1480_s7] sm:$0xff] %vm897_vm1, %v865_v19  ;;  %v835_v31 = vadd.f32 %v803_v17, %v771_v21  ;;  %v810_v19 = vld [vmem:[%s1455_s27 + $0x48] sm:$0xff] }
  0xf9   : > { %914 = vst.msk [vmem:[%s1480_s7 + $0x80] sm:$0xff] %vm897_vm1, %v881_v20  ;;  %v851_v32 = vadd.f32 %v819_v18, %v787_v22  ;;  %v734_v35 = vmul.f32 %v1449_v45, %v584_v29  ;;  %v750_v36 = vmul.f32 %v1449_v45, %v664_v30  ;;  %v868_v37 = vmax.f32 %v836_v25, 0.0  ;;  %v826_v20 = vld [vmem:[%s1455_s27 + $0xc8] sm:$0xff] }
  0xfa   : > { %v884_v38 = vmax.f32 %v852_v26, 0.0  ;;  %v774_v39 = vadd.f32 %v1460_v47, %v735_v27  ;;  %v790_v40 = vadd.f32 %v1460_v47, %v751_v28  ;;  %v867_v43 = vmax.f32 %v835_v31, 0.0  ;;  %v1188_v49 = vpop.f32.mrb[6].mxu0  ;;  %v809_v27 = vld [vmem:[%s1455_s27 + $0x40] sm:$0xff] }
  0xfb   : > { %v883_v44 = vmax.f32 %v851_v32, 0.0  ;;  %v773_v46 = vadd.f32 %v1460_v47, %v734_v35  ;;  %v789_v48 = vadd.f32 %v1460_v47, %v750_v36  ;;  %v1212_v50 = vpop.f32.mrb[6].mxu1  ;;  %901 = vst.msk [vmem:[%s1480_s7 + $0x18] sm:$0xff] %vm897_vm1, %v868_v37  ;;  %v737_v53 = vmul.f32 %v1188_v49, %v1449_v45  ;;  %v594_v55 = vpop.f32.mrb[7].mxu0  ;;  %v825_v28 = vld [vmem:[%s1455_s27 + $0xc0] sm:$0xff] }
  0xfc   : > { %917 = vst.msk [vmem:[%s1480_s7 + $0x98] sm:$0xff] %vm897_vm1, %v884_v38  ;;  %v838_v51 = vadd.f32 %v806_v33, %v774_v39  ;;  %v854_v52 = vadd.f32 %v822_v34, %v790_v40  ;;  %v753_v54 = vmul.f32 %v1212_v50, %v1449_v45  ;;  %v674_v56 = vpop.f32.mrb[7].mxu1  ;;  %900 = vst.msk [vmem:[%s1480_s7 + $0x10] sm:$0xff] %vm897_vm1, %v867_v43  ;;  %v812_v43 = vld [vmem:[%s1455_s27 + $0x58] sm:$0xff] }
  0xfd   : > { %916 = vst.msk [vmem:[%s1480_s7 + $0x90] sm:$0xff] %vm897_vm1, %v883_v44  ;;  %v837_v57 = vadd.f32 %v805_v41, %v773_v46  ;;  %v853_v58 = vadd.f32 %v821_v42, %v789_v48  ;;  %v736_v61 = vmul.f32 %v1449_v45, %v594_v55  ;;  %v752_v62 = vmul.f32 %v1449_v45, %v674_v56  ;;  %v828_v44 = vld [vmem:[%s1455_s27 + $0xd8] sm:$0xff] }
  0xfe   : > { %v870_v63 = vmax.f32 %v838_v51, 0.0  ;;  %v886_v0 = vmax.f32 %v854_v52, 0.0  ;;  %v776_v1 = vadd.f32 %v1460_v47, %v737_v53  ;;  %v792_v2 = vadd.f32 %v1460_v47, %v753_v54  ;;  %v1191_v9 = vpop.f32.mrb[8].mxu0  ;;  %v811_v53 = vld [vmem:[%s1455_s27 + $0x50] sm:$0xff] }
  0xff   : > { %v869_v5 = vmax.f32 %v837_v57, 0.0  ;;  %v885_v6 = vmax.f32 %v853_v58, 0.0  ;;  %v775_v7 = vadd.f32 %v1460_v47, %v736_v61  ;;  %v791_v8 = vadd.f32 %v1460_v47, %v752_v62  ;;  %v1215_v10 = vpop.f32.mrb[8].mxu1  ;;  %v604_v15 = vpop.f32.mrb[9].mxu0  ;;  %v827_v54 = vld [vmem:[%s1455_s27 + $0xd0] sm:$0xff] }
 0x100   : > { %903 = vst.msk [vmem:[%s1480_s7 + $0x28] sm:$0xff] %vm897_vm1, %v870_v63  ;;  %919 = vst.msk [vmem:[%s1480_s7 + $0xa8] sm:$0xff] %vm897_vm1, %v886_v0  ;;  %v840_v11 = vadd.f32 %v808_v59, %v776_v1  ;;  %v856_v12 = vadd.f32 %v824_v60, %v792_v2  ;;  %v739_v13 = vmul.f32 %v1191_v9, %v1449_v45  ;;  %v684_v16 = vpop.f32.mrb[9].mxu1 }
 0x101   : > { %v755_v14 = vmul.f32 %v1215_v10, %v1449_v45  ;;  %902 = vst.msk [vmem:[%s1480_s7 + $0x20] sm:$0xff] %vm897_vm1, %v869_v5  ;;  %918 = vst.msk [vmem:[%s1480_s7 + $0xa0] sm:$0xff] %vm897_vm1, %v885_v6  ;;  %v839_v17 = vadd.f32 %v807_v3, %v775_v7  ;;  %v855_v18 = vadd.f32 %v823_v4, %v791_v8  ;;  %v814_v5 = vld [vmem:[%s1455_s27 + $0x68] sm:$0xff] }
 0x102   : > { %v738_v21 = vmul.f32 %v1449_v45, %v604_v15  ;;  %v754_v22 = vmul.f32 %v1449_v45, %v684_v16  ;;  %v872_v23 = vmax.f32 %v840_v11, 0.0  ;;  %v888_v24 = vmax.f32 %v856_v12, 0.0  ;;  %v1194_v33 = vpop.f32.mrb[10].mxu0  ;;  %v830_v6 = vld [vmem:[%s1455_s27 + $0xe8] sm:$0xff] }
 0x103   : > { %v778_v25 = vadd.f32 %v1460_v47, %v739_v13  ;;  %v794_v26 = vadd.f32 %v1460_v47, %v755_v14  ;;  %v871_v29 = vmax.f32 %v839_v17, 0.0  ;;  %v887_v30 = vmax.f32 %v855_v18, 0.0  ;;  %v1218_v34 = vpop.f32.mrb[10].mxu1  ;;  %v614_v39 = vpop.f32.mrb[11].mxu0  ;;  %v813_v13 = vld [vmem:[%s1455_s27 + $0x60] sm:$0xff] }
 0x104   : > { %v777_v31 = vadd.f32 %v1460_v47, %v738_v21  ;;  %v793_v32 = vadd.f32 %v1460_v47, %v754_v22  ;;  %905 = vst.msk [vmem:[%s1480_s7 + $0x38] sm:$0xff] %vm897_vm1, %v872_v23  ;;  %921 = vst.msk [vmem:[%s1480_s7 + $0xb8] sm:$0xff] %vm897_vm1, %v888_v24  ;;  %v741_v37 = vmul.f32 %v1194_v33, %v1449_v45  ;;  %v694_v40 = vpop.f32.mrb[11].mxu1  ;;  %v829_v14 = vld [vmem:[%s1455_s27 + $0xe0] sm:$0xff] }
 0x105   : > { %v842_v35 = vadd.f32 %v810_v19, %v778_v25  ;;  %v858_v36 = vadd.f32 %v826_v20, %v794_v26  ;;  %v757_v38 = vmul.f32 %v1218_v34, %v1449_v45  ;;  %904 = vst.msk [vmem:[%s1480_s7 + $0x30] sm:$0xff] %vm897_vm1, %v871_v29  ;;  %920 = vst.msk [vmem:[%s1480_s7 + $0xb0] sm:$0xff] %vm897_vm1, %v887_v30  ;;  %v816_v29 = vld [vmem:[%s1455_s27 + $0x78] sm:$0xff] }
 0x106   : > { %v841_v41 = vadd.f32 %v809_v27, %v777_v31  ;;  %v857_v42 = vadd.f32 %v825_v28, %v793_v32  ;;  %v740_v46 = vmul.f32 %v1449_v45, %v614_v39  ;;  %v756_v48 = vmul.f32 %v1449_v45, %v694_v40  ;;  %v1197_v59 = vpop.f32.mrb[12].mxu0  ;;  %v832_v30 = vld [vmem:[%s1455_s27 + $0xf8] sm:$0xff] }
 0x107   : > { %v874_v49 = vmax.f32 %v842_v35, 0.0  ;;  %v890_v50 = vmax.f32 %v858_v36, 0.0  ;;  %v780_v51 = vadd.f32 %v1460_v47, %v741_v37  ;;  %v796_v52 = vadd.f32 %v1460_v47, %v757_v38  ;;  %v1221_v60 = vpop.f32.mrb[12].mxu1  ;;  %v624_v1 = vpop.f32.mrb[13].mxu0  ;;  %v815_v37 = vld [vmem:[%s1455_s27 + $0x70] sm:$0xff] }
 0x108   : > { %v873_v55 = vmax.f32 %v841_v41, 0.0  ;;  %v889_v56 = vmax.f32 %v857_v42, 0.0  ;;  %v779_v57 = vadd.f32 %v1460_v47, %v740_v46  ;;  %v795_v58 = vadd.f32 %v1460_v47, %v756_v48  ;;  %v704_v2 = vpop.f32.mrb[13].mxu1  ;;  %v831_v38 = vld [vmem:[%s1455_s27 + $0xf0] sm:$0xff] }
 0x109   : > { %907 = vst.msk [vmem:[%s1480_s7 + $0x48] sm:$0xff] %vm897_vm1, %v874_v49  ;;  %923 = vst.msk [vmem:[%s1480_s7 + $0xc8] sm:$0xff] %vm897_vm1, %v890_v50  ;;  %v844_v61 = vadd.f32 %v812_v43, %v780_v51  ;;  %v860_v62 = vadd.f32 %v828_v44, %v796_v52  ;;  %v743_v63 = vmul.f32 %v1197_v59, %v1449_v45 }
 0x10a   : > { %v759_v0 = vmul.f32 %v1221_v60, %v1449_v45  ;;  %906 = vst.msk [vmem:[%s1480_s7 + $0x40] sm:$0xff] %vm897_vm1, %v873_v55  ;;  %922 = vst.msk [vmem:[%s1480_s7 + $0xc0] sm:$0xff] %vm897_vm1, %v889_v56  ;;  %v843_v3 = vadd.f32 %v811_v53, %v779_v57  ;;  %v859_v4 = vadd.f32 %v827_v54, %v795_v58  ;;  %v1200_v19 = vpop.f32.mrb[14].mxu0 }
 0x10b   : > { %v742_v7 = vmul.f32 %v1449_v45, %v624_v1  ;;  %v758_v8 = vmul.f32 %v1449_v45, %v704_v2  ;;  %v876_v9 = vmax.f32 %v844_v61, 0.0  ;;  %v892_v10 = vmax.f32 %v860_v62, 0.0  ;;  %v1224_v20 = vpop.f32.mrb[14].mxu1  ;;  %v634_v25 = vpop.f32.mrb[15].mxu0 }
 0x10c   : > { %v782_v11 = vadd.f32 %v1460_v47, %v743_v63  ;;  %v798_v12 = vadd.f32 %v1460_v47, %v759_v0  ;;  %v875_v15 = vmax.f32 %v843_v3, 0.0  ;;  %v891_v16 = vmax.f32 %v859_v4, 0.0  ;;  %v714_v26 = vpop.f32.mrb[15].mxu1 }
 0x10d   : > { %v781_v17 = vadd.f32 %v1460_v47, %v742_v7  ;;  %v797_v18 = vadd.f32 %v1460_v47, %v758_v8  ;;  %909 = vst.msk [vmem:[%s1480_s7 + $0x58] sm:$0xff] %vm897_vm1, %v876_v9  ;;  %925 = vst.msk [vmem:[%s1480_s7 + $0xd8] sm:$0xff] %vm897_vm1, %v892_v10  ;;  %v745_v23 = vmul.f32 %v1200_v19, %v1449_v45 }
 0x10e   : > { %v846_v21 = vadd.f32 %v814_v5, %v782_v11  ;;  %v862_v22 = vadd.f32 %v830_v6, %v798_v12  ;;  %v761_v24 = vmul.f32 %v1224_v20, %v1449_v45  ;;  %908 = vst.msk [vmem:[%s1480_s7 + $0x50] sm:$0xff] %vm897_vm1, %v875_v15  ;;  %924 = vst.msk [vmem:[%s1480_s7 + $0xd0] sm:$0xff] %vm897_vm1, %v891_v16 }
 0x10f   : > { %v845_v27 = vadd.f32 %v813_v13, %v781_v17  ;;  %v861_v28 = vadd.f32 %v829_v14, %v797_v18  ;;  %v744_v31 = vmul.f32 %v1449_v45, %v634_v25  ;;  %v760_v32 = vmul.f32 %v1449_v45, %v714_v26 }
 0x110   : > { %v878_v33 = vmax.f32 %v846_v21, 0.0  ;;  %v894_v34 = vmax.f32 %v862_v22, 0.0  ;;  %v784_v35 = vadd.f32 %v1460_v47, %v745_v23  ;;  %v800_v36 = vadd.f32 %v1460_v47, %v761_v24 }
 0x111   : > { %v877_v39 = vmax.f32 %v845_v27, 0.0  ;;  %v893_v40 = vmax.f32 %v861_v28, 0.0  ;;  %v783_v41 = vadd.f32 %v1460_v47, %v744_v31  ;;  %v799_v42 = vadd.f32 %v1460_v47, %v760_v32 }
 0x112   : > { %911 = vst.msk [vmem:[%s1480_s7 + $0x68] sm:$0xff] %vm897_vm1, %v878_v33  ;;  %927 = vst.msk [vmem:[%s1480_s7 + $0xe8] sm:$0xff] %vm897_vm1, %v894_v34  ;;  %v848_v45 = vadd.f32 %v816_v29, %v784_v35  ;;  %v864_v43 = vadd.f32 %v832_v30, %v800_v36 }
 0x113   : > { %910 = vst.msk [vmem:[%s1480_s7 + $0x60] sm:$0xff] %vm897_vm1, %v877_v39  ;;  %926 = vst.msk [vmem:[%s1480_s7 + $0xe0] sm:$0xff] %vm897_vm1, %v893_v40  ;;  %v847_v44 = vadd.f32 %v815_v37, %v783_v41  ;;  %v863_v46 = vadd.f32 %v831_v38, %v799_v42 }
 0x114   : > { %v880_v48 = vmax.f32 %v848_v45, 0.0  ;;  %v896_v49 = vmax.f32 %v864_v43, 0.0 }
 0x115   : > { %v879_v50 = vmax.f32 %v847_v44, 0.0  ;;  %v895_v51 = vmax.f32 %v863_v46, 0.0 }
 0x116   : > { %913 = vst.msk [vmem:[%s1480_s7 + $0x78] sm:$0xff] %vm897_vm1, %v880_v48  ;;  %929 = vst.msk [vmem:[%s1480_s7 + $0xf8] sm:$0xff] %vm897_vm1, %v896_v49 }
 0x117   : > { %912 = vst.msk [vmem:[%s1480_s7 + $0x70] sm:$0xff] %vm897_vm1, %v879_v50  ;;  %928 = vst.msk [vmem:[%s1480_s7 + $0xf0] sm:$0xff] %vm897_vm1, %v895_v51 }
 0x118 PF: > { %s15_s20 = sadd.s32 1, %s1297_s20   ;;  %s1643_s18 = smov %s1293_s19 }
 0x119   : > { %p12_p5 = scmp.ge.s32.totalorder %s15_s20, 4   ;;  %s1644_s19 = smov %s1646_s21 }
 0x11b   :  { %14 = sbr.rel (!%p12_p5) target bundleno = 2 (0x2), region = 82 }

</bundles_post_ra>
